<compile_context>
chip_gen: v6e
topology: v6e:2x2x1
jax: 0.10.0
libtpu: 0.0.40
codegen_flags: <defaults>
</compile_context>

<pallas_src>
from functools import partial

import jax
import jax.numpy as jnp
from jax import lax
from jax.experimental import pallas as pl
from jax.experimental.pallas import tpu as pltpu

_LANES = 128
_GELU_C = 0.7978845608028654        # sqrt(2 / pi)

# rows of the packed per-channel constant table (cvecs)
_IDX_DW0 = 0      # rows 0..8: depthwise 3x3 taps, row = ky*3 + kx
_IDX_BDW = 9      # depthwise-conv bias
_IDX_B1 = 10      # conv1 bias
_IDX_S1 = 11      # BN1 scale (folded, inference mode)
_IDX_T1 = 12      # BN1 shift (folded, inference mode)
_CVEC_ROWS = 16   # padded to a multiple of 8 sublanes


def _gelu(x):
    # tanh-approximate GELU: one EUP tanh plus a handful of VALU ops.
    return 0.5 * x * (1.0 + jnp.tanh(_GELU_C * (x + 0.044715 * x * x * x)))


def mlp_kernel(xt_ref, xm_ref, xb_ref, w1_ref, cv_ref, w2_ref, b2_ref,
               o_ref, h_ref, *, tile_h, W, dw_dtype):
    f32 = jnp.float32
    R = tile_h + 2
    RW = R * W
    TW = tile_h * W
    Cp = w1_ref.shape[1]

    t = pl.program_id(1)
    is_first = t == 0
    is_last = t == pl.num_programs(1) - 1

    cv = cv_ref[...]                          # (16, Cp) packed per-channel consts

    # ---- conv1 (1x1): one MXU matmul over body + 2 halo rows, then bias,
    #      GELU, BN1 on the VPU in f32 ----
    x = jnp.concatenate(
        [xt_ref[0, 0], xm_ref[0].reshape(TW, xm_ref.shape[-1]), xb_ref[0, 0]],
        axis=0)                                              # (R*W, Cin_p) bf16
    h = jnp.dot(x, w1_ref[...], preferred_element_type=f32)
    h = _gelu(h + cv[_IDX_B1][None, :]) * cv[_IDX_S1][None, :] + cv[_IDX_T1][None, :]

    # hidden goes to VMEM scratch; image-boundary halo rows are zeroed with
    # narrow conditional writes (no full-tile row-mask pass).
    h_ref[...] = h

    @pl.when(is_first)
    def _():
        h_ref[pl.ds(0, W), :] = jnp.zeros((W, Cp), f32)

    @pl.when(is_last)
    def _():
        h_ref[pl.ds((R - 1) * W, W), :] = jnp.zeros((W, Cp), f32)

    hm = h_ref[...]                                          # (R*W, Cp) f32

    # ---- depthwise 3x3: flat sublane rolls (XLU) for the west/east taps, one
    #      column select each (handles roll wrap AND image left/right border),
    #      then 9 static tap MACs (bf16 on v6e/v7x, f32 on v5e) ----
    col = lax.broadcasted_iota(jnp.int32, (RW, 1), 0) % W
    west = jnp.where(col == 0, 0.0, pltpu.roll(hm, 1, axis=0))
    east = jnp.where(col == W - 1, 0.0, pltpu.roll(hm, RW - 1, axis=0))

    shifted = tuple(a.astype(dw_dtype) for a in (west, hm, east))   # kx = 0,1,2

    acc = jnp.zeros((TW, Cp), dw_dtype)
    for ky in range(3):
        for kx in range(3):
            tap = cv[_IDX_DW0 + ky * 3 + kx][None, :].astype(dw_dtype)
            acc = acc + shifted[kx][ky * W: ky * W + TW, :] * tap

    # ---- dw bias + residual + GELU; BN2 / conv2-bias / BN3 were folded into
    #      w2 / b2 on the host ----
    y = _gelu(acc.astype(f32) + cv[_IDX_BDW][None, :] + hm[W:W + TW, :])
    o = jnp.dot(y.astype(jnp.bfloat16), w2_ref[...],
                preferred_element_type=f32) + b2_ref[...]
    o_ref[0] = o.astype(o_ref.dtype)


def _round_up(v, m):
    return (v + m - 1) // m * m


def _tpu_vmem_capacity_bytes():
    try:
        return int(pltpu.get_tpu_info().vmem_capacity_bytes)
    except Exception:
        return 64 * 2 ** 20              # conservative (v7x per-core capacity)


def _dw_compute_dtype():
    """bf16 taps on chips with a bf16 VALU (v6e / v7x); f32 otherwise."""
    try:
        kind = jax.devices()[0].device_kind.lower()
    except Exception:
        return jnp.float32
    if any(v in kind for v in ("v2", "v3", "v4", "v5")):
        return jnp.float32
    return jnp.bfloat16


def _select_tile(B, H, W, cin_p, chid_p, cout_p):
    """Pick tile_h (a divisor of H) + vmem limit against the real working set."""
    cap = _tpu_vmem_capacity_bytes()
    vmem_limit = max(32 * 2 ** 20, min(int(cap * 0.75), 100 * 2 ** 20))

    # operands resident whatever the tile size (pipeline double-buffers: x2).
    fixed = 2 * (2 * (cin_p + cout_p) * chid_p            # bf16 w1 + folded w2
                 + 4 * (_CVEC_ROWS * chid_p + cout_p))    # f32 const table

    def step_bytes(d):
        rw, tw = (d + 2) * W, d * W
        work = 8 * rw * chid_p * 4                        # f32 hidden live set
        io = 2 * (tw + 2 * W) * cin_p * 2 + 2 * tw * cout_p * 4
        return work + io

    budget = vmem_limit - fixed
    cands = [d for d in range(1, H + 1)
             if H % d == 0 and (d == H or (d * W) % 8 == 0)]
    cands.sort(reverse=True)
    pool = [d for d in cands if step_bytes(d) <= budget] or [cands[-1]]

    halo_ok = lambda d: ((d + 2) * W) % 8 == 0            # aligned conv1 M dim
    two_steps = lambda d: B * (H // d) >= 2               # feed both v7x TCs
    for pred in (lambda d: two_steps(d) and halo_ok(d), two_steps, halo_ok,
                 lambda d: True):
        for d in pool:
            if pred(d):
                return d, vmem_limit
    return pool[0], vmem_limit


def prepare_params(w1_t, b1_t, s1, t1, wdw_t, bdw_t, s2, t2, w2_t, b2_t, s3, t3):
    """PyTorch-layout weights -> padded / folded / packed kernel layout.

    w1_t : (Chid, Cin, 1, 1)  conv1.0.weight     b1_t : (Chid,)
    wdw_t: (Chid, 1, 3, 3)    proj.weight (dw)   bdw_t: (Chid,)
    w2_t : (Cout, Chid, 1, 1) conv2.0.weight     b2_t : (Cout,)
    s*/t*: folded BatchNorm2d scale/shift vectors (inference mode).
    """
    Chid, Cin = w1_t.shape[:2]
    Cout = w2_t.shape[0]
    Cin_p = _round_up(Cin, _LANES)
    Chid_p = _round_up(Chid, _LANES)
    Cout_p = _round_up(Cout, _LANES)
    f32 = jnp.float32

    w1 = w1_t.reshape(Chid, Cin).T.astype(f32)                 # (Cin, Chid)
    w2 = w2_t.reshape(Cout, Chid).T.astype(f32)                # (Chid, Cout)
    wdw = wdw_t.reshape(Chid, 9).T.astype(f32)                 # (9, Chid) tap-major

    # fold BN2 / conv2 bias / BN3 into the second matmul:
    #   ((y*s2 + t2) @ w2 + b2) * s3 + t3  ==  y @ w2f + b2f
    w2f = (s2[:, None] * w2) * s3[None, :]
    b2f = t2 @ (w2 * s3[None, :]) + b2_t * s3 + t3

    def pad2(a, r, c):
        return jnp.pad(a, ((0, r - a.shape[0]), (0, c - a.shape[1])))

    w1_p = pad2(w1, Cin_p, Chid_p).astype(jnp.bfloat16)
    w2f_p = pad2(w2f, Chid_p, Cout_p).astype(jnp.bfloat16)
    b2f_p = jnp.pad(b2f, ((0, Cout_p - Cout),)).astype(f32).reshape(1, Cout_p)

    cvecs = jnp.zeros((_CVEC_ROWS, Chid_p), f32)
    cvecs = cvecs.at[_IDX_DW0:_IDX_DW0 + 9, :Chid].set(wdw)
    cvecs = cvecs.at[_IDX_BDW, :Chid].set(bdw_t.astype(f32))
    cvecs = cvecs.at[_IDX_B1, :Chid].set(b1_t.astype(f32))
    cvecs = cvecs.at[_IDX_S1, :Chid].set(s1.astype(f32))
    cvecs = cvecs.at[_IDX_T1, :Chid].set(t1.astype(f32))

    return (w1_p, cvecs, w2f_p, b2f_p, Cout)


def mlp_pallas(x, kparams, H, W):
    B, N, Cin = x.shape
    assert N == H * W, "Mlp expects N == H * W"
    w1_p, cvecs, w2f_p, b2f_p, c_out = kparams
    Cin_p, Chid_p = w1_p.shape
    Cout_p = w2f_p.shape[1]

    tile_h, vmem_limit = _select_tile(B, H, W, Cin_p, Chid_p, Cout_p)
    n_tiles = H // tile_h
    dw_dtype = _dw_compute_dtype()

    # single cheap prep pass: (B,N,Cin) -> channel-padded bf16 (B,H,W,Cin_p).
    # Halo rows are NOT materialized: each grid step reads its body block and
    # two 1-row halo blocks directly from this array.
    x_p = jnp.pad(x.reshape(B, H, W, Cin).astype(jnp.bfloat16),
                  ((0, 0), (0, 0), (0, 0), (0, Cin_p - Cin)))

    top_map = lambda b, t: (b, jnp.maximum(t * tile_h - 1, 0), 0, 0)
    bot_map = lambda b, t: (b, jnp.minimum((t + 1) * tile_h, H - 1), 0, 0)

    grid_spec = pltpu.PrefetchScalarGridSpec(
        num_scalar_prefetch=0,
        grid=(B, n_tiles),
        in_specs=[
            pl.BlockSpec((1, 1, W, Cin_p), top_map),                      # top halo row
            pl.BlockSpec((1, tile_h, W, Cin_p), lambda b, t: (b, t, 0, 0)),  # body rows
            pl.BlockSpec((1, 1, W, Cin_p), bot_map),                      # bottom halo row
            pl.BlockSpec((Cin_p, Chid_p), lambda b, t: (0, 0)),           # conv1 weight (bf16)
            pl.BlockSpec((_CVEC_ROWS, Chid_p), lambda b, t: (0, 0)),      # packed consts
            pl.BlockSpec((Chid_p, Cout_p), lambda b, t: (0, 0)),          # folded conv2 weight
            pl.BlockSpec((1, Cout_p), lambda b, t: (0, 0)),               # folded conv2 bias
        ],
        out_specs=pl.BlockSpec((1, tile_h * W, Cout_p), lambda b, t: (b, t, 0)),
        scratch_shapes=[pltpu.VMEM(((tile_h + 2) * W, Chid_p), jnp.float32)],
    )

    out = pl.pallas_call(
        partial(mlp_kernel, tile_h=tile_h, W=W, dw_dtype=dw_dtype),
        out_shape=jax.ShapeDtypeStruct((B, N, Cout_p), x.dtype),
        grid_spec=grid_spec,
        compiler_params=pltpu.CompilerParams(
            dimension_semantics=("parallel", "parallel"),
            vmem_limit_bytes=vmem_limit),
    )(x_p, x_p, x_p, w1_p, cvecs, w2f_p, b2f_p)

    # lane-dense (Cout_p) store inside the kernel; trim the channel padding
    # here (a consumer that accepts the padded array can skip this copy).
    return out[:, :, :c_out]


def mlp_reference(x, ref_params, H, W):
    """Plain-JAX f32 reference of the PyTorch module (eval-mode BatchNorm)."""
    (w1_t, b1_t, s1, t1, wdw_t, bdw_t, s2, t2, w2_t, b2_t, s3, t3) = ref_params
    B, N, Cin = x.shape
    Chid = w1_t.shape[0]
    Cout = w2_t.shape[0]
    xf = x.astype(jnp.float32)
    w1 = w1_t.reshape(Chid, Cin).T
    w2 = w2_t.reshape(Cout, Chid).T
    wdw = wdw_t.reshape(Chid, 9).T

    h = jax.nn.gelu(xf @ w1 + b1_t, approximate=False) * s1 + t1      # conv1+GELU+BN1
    h_hw = h.reshape(B, H, W, Chid)
    hp = jnp.pad(h_hw, ((0, 0), (1, 1), (1, 1), (0, 0)))
    acc = jnp.zeros_like(h_hw)
    for k in range(9):                                                # depthwise 3x3
        ky, kx = divmod(k, 3)
        acc = acc + hp[:, ky:ky + H, kx:kx + W, :] * wdw[k].reshape(1, 1, 1, Chid)
    acc = acc + bdw_t.reshape(1, 1, 1, Chid)
    y = jax.nn.gelu(acc + h_hw, approximate=False).reshape(B, N, Chid) * s2 + t2
    o = (y @ w2 + b2_t) * s3 + t3                                     # conv2 + BN3
    return o.astype(x.dtype)


if __name__ == "__main__":
    key = jax.random.PRNGKey(0)
    B, H, W = 2, 8, 8
    Cin, Chid, Cout = 16, 32, 16           # in_features, hidden_features, out_features
    N = H * W
    ks = jax.random.split(key, 16)

    # input in the module's (B, N, C) convention, N = H*W
    x = jax.random.normal(ks[0], (B, N, Cin), jnp.float32)

    # --- deterministic parameters in PyTorch shapes ---
    w1_t = 0.1 * jax.random.normal(ks[1], (Chid, Cin, 1, 1), jnp.float32)   # conv1.0.weight
    b1_t = 0.1 * jax.random.normal(ks[2], (Chid,), jnp.float32)             # conv1.0.bias
    wdw_t = 0.1 * jax.random.normal(ks[3], (Chid, 1, 3, 3), jnp.float32)    # proj.weight (dw)
    bdw_t = 0.1 * jax.random.normal(ks[4], (Chid,), jnp.float32)            # proj.bias
    w2_t = 0.1 * jax.random.normal(ks[5], (Cout, Chid, 1, 1), jnp.float32)  # conv2.0.weight
    b2_t = 0.1 * jax.random.normal(ks[6], (Cout,), jnp.float32)             # conv2.0.bias

    def bn_fold(kg, kb, km, kv, c, eps=1e-5):
        gamma = 1.0 + 0.1 * jax.random.normal(kg, (c,), jnp.float32)
        beta = 0.1 * jax.random.normal(kb, (c,), jnp.float32)
        mean = 0.1 * jax.random.normal(km, (c,), jnp.float32)
        var = jax.random.uniform(kv, (c,), jnp.float32, minval=0.5, maxval=1.5)
        scale = gamma / jnp.sqrt(var + eps)
        shift = beta - mean * scale
        return scale, shift

    s1, t1 = bn_fold(ks[7], ks[8], ks[9], ks[10], Chid)     # conv1.2 BatchNorm2d
    s2, t2 = bn_fold(ks[11], ks[12], ks[13], ks[14], Chid)  # proj_bn
    k3 = jax.random.split(ks[15], 4)
    s3, t3 = bn_fold(k3[0], k3[1], k3[2], k3[3], Cout)      # conv2.1 BatchNorm2d

    ref_params = (w1_t, b1_t, s1, t1, wdw_t, bdw_t, s2, t2, w2_t, b2_t, s3, t3)
    kparams = prepare_params(*ref_params)

    out = jax.block_until_ready(mlp_pallas(x, kparams, H, W))
    ref = mlp_reference(x, ref_params, H, W)

    assert out.shape == (B, N, Cout)
    # kernel uses bf16 MXU operands (f32 accumulation), tanh-approx GELU and
    # (on v6e/v7x) bf16 depthwise taps; reference is exact-erf f32.
    err = float(jnp.max(jnp.abs(out - ref)))
    assert jnp.allclose(out, ref, rtol=2e-2, atol=2e-2), err
    print("KERNEL_OK")
</pallas_src>

<mosaic_0001>
module attributes {stable_mosaic.version = 11 : i64} {
  func.func @mlp_kernel(%arg0: i32, %arg1: i32, %arg2: memref<1x1x8x128xbf16, #tpu.memory_space<vmem>>, %arg3: memref<1x8x8x128xbf16, #tpu.memory_space<vmem>>, %arg4: memref<1x1x8x128xbf16, #tpu.memory_space<vmem>>, %arg5: memref<128x128xbf16, #tpu.memory_space<vmem>>, %arg6: memref<16x128xf32, #tpu.memory_space<vmem>>, %arg7: memref<128x128xbf16, #tpu.memory_space<vmem>>, %arg8: memref<1x128xf32, #tpu.memory_space<vmem>>, %arg9: memref<1x64x128xf32, #tpu.memory_space<vmem>>, %arg10: memref<80x128xf32, #tpu.memory_space<vmem>>) attributes {dimension_semantics = [#tpu.dimension_semantics<parallel>, #tpu.dimension_semantics<parallel>], iteration_bounds = array<i64: 2, 1>, scalar_prefetch = 0 : i64, scratch_operands = 1 : i64, tpu.core_type = #tpu.core_type<tc>, window_params = [{transform_indices = @transform_0, window_bounds = array<i64: 1, 1, 8, 128>}, {transform_indices = @transform_1, window_bounds = array<i64: 1, 8, 8, 128>}, {transform_indices = @transform_2, window_bounds = array<i64: 1, 1, 8, 128>}, {pipeline_mode = #tpu.pipeline_mode<synchronous>, transform_indices = @transform_3, window_bounds = array<i64: 128, 128>}, {pipeline_mode = #tpu.pipeline_mode<synchronous>, transform_indices = @transform_4, window_bounds = array<i64: 16, 128>}, {pipeline_mode = #tpu.pipeline_mode<synchronous>, transform_indices = @transform_5, window_bounds = array<i64: 128, 128>}, {pipeline_mode = #tpu.pipeline_mode<synchronous>, transform_indices = @transform_6, window_bounds = array<i64: 1, 128>}, {transform_indices = @transform_7, window_bounds = array<i64: 1, 64, 128>}]} {
    %c0_i32 = arith.constant 0 : i32
    %0 = arith.cmpi eq, %arg1, %c0_i32 : i32
    %c0_i32_0 = arith.constant 0 : i32
    %1 = arith.cmpi eq, %arg1, %c0_i32_0 : i32
    %c0 = arith.constant 0 : index
    %c0_1 = arith.constant 0 : index
    %2 = vector.load %arg6[%c0, %c0_1] : memref<16x128xf32, #tpu.memory_space<vmem>>, vector<16x128xf32>
    %c0_2 = arith.constant 0 : index
    %c0_3 = arith.constant 0 : index
    %c0_4 = arith.constant 0 : index
    %c0_5 = arith.constant 0 : index
    %3 = vector.load %arg2[%c0_2, %c0_3, %c0_4, %c0_5] : memref<1x1x8x128xbf16, #tpu.memory_space<vmem>>, vector<1x1x8x128xbf16>
    %4 = vector.shape_cast %3 : vector<1x1x8x128xbf16> to vector<8x128xbf16>
    %c0_6 = arith.constant 0 : index
    %c0_7 = arith.constant 0 : index
    %c0_8 = arith.constant 0 : index
    %c0_9 = arith.constant 0 : index
    %5 = vector.load %arg3[%c0_6, %c0_7, %c0_8, %c0_9] : memref<1x8x8x128xbf16, #tpu.memory_space<vmem>>, vector<1x8x8x128xbf16>
    %6 = vector.shape_cast %5 : vector<1x8x8x128xbf16> to vector<8x8x128xbf16>
    %7 = vector.shape_cast %6 : vector<8x8x128xbf16> to vector<64x128xbf16>
    %c0_10 = arith.constant 0 : index
    %c0_11 = arith.constant 0 : index
    %c0_12 = arith.constant 0 : index
    %c0_13 = arith.constant 0 : index
    %8 = vector.load %arg4[%c0_10, %c0_11, %c0_12, %c0_13] : memref<1x1x8x128xbf16, #tpu.memory_space<vmem>>, vector<1x1x8x128xbf16>
    %9 = vector.shape_cast %8 : vector<1x1x8x128xbf16> to vector<8x128xbf16>
    %10 = tpu.concatenate %4, %7, %9 in 0 : vector<8x128xbf16>, vector<64x128xbf16>, vector<8x128xbf16> -> vector<80x128xbf16>
    %c0_14 = arith.constant 0 : index
    %c0_15 = arith.constant 0 : index
    %11 = vector.load %arg5[%c0_14, %c0_15] : memref<128x128xbf16, #tpu.memory_space<vmem>>, vector<128x128xbf16>
    %cst = arith.constant dense<0.000000e+00> : vector<80x128xf32>
    %12 = tpu.matmul %10, %11, %cst {dimension_numbers = #tpu.dot_dimension_numbers<[1], [0], [0], [1], [0, 0, 1, 1], [], []>} : vector<80x128xbf16>, vector<128x128xbf16>, vector<80x128xf32> -> vector<80x128xf32>
    %13 = vector.extract_strided_slice %2 {offsets = [10, 0], sizes = [1, 128], strides = [1, 1]} : vector<16x128xf32> to vector<1x128xf32>
    %14 = vector.shape_cast %13 : vector<1x128xf32> to vector<128xf32>
    %15 = vector.shape_cast %14 : vector<128xf32> to vector<1x128xf32>
    %16 = vector.broadcast %15 : vector<1x128xf32> to vector<80x128xf32>
    %17 = arith.addf %12, %16 : vector<80x128xf32>
    %cst_16 = arith.constant 5.000000e-01 : f32
    %18 = vector.broadcast %cst_16 : f32 to vector<80x128xf32>
    %19 = arith.mulf %18, %17 : vector<80x128xf32>
    %cst_17 = arith.constant 4.471500e-02 : f32
    %20 = vector.broadcast %cst_17 : f32 to vector<80x128xf32>
    %21 = arith.mulf %20, %17 : vector<80x128xf32>
    %22 = arith.mulf %21, %17 : vector<80x128xf32>
    %23 = arith.mulf %22, %17 : vector<80x128xf32>
    %24 = arith.addf %17, %23 : vector<80x128xf32>
    %cst_18 = arith.constant 0.797884583 : f32
    %25 = vector.broadcast %cst_18 : f32 to vector<80x128xf32>
    %26 = arith.mulf %25, %24 : vector<80x128xf32>
    %27 = math.tanh %26 : vector<80x128xf32>
    %cst_19 = arith.constant 1.000000e+00 : f32
    %28 = vector.broadcast %cst_19 : f32 to vector<80x128xf32>
    %29 = arith.addf %28, %27 : vector<80x128xf32>
    %30 = arith.mulf %19, %29 : vector<80x128xf32>
    %31 = vector.extract_strided_slice %2 {offsets = [11, 0], sizes = [1, 128], strides = [1, 1]} : vector<16x128xf32> to vector<1x128xf32>
    %32 = vector.shape_cast %31 : vector<1x128xf32> to vector<128xf32>
    %33 = vector.shape_cast %32 : vector<128xf32> to vector<1x128xf32>
    %34 = vector.broadcast %33 : vector<1x128xf32> to vector<80x128xf32>
    %35 = arith.mulf %30, %34 : vector<80x128xf32>
    %36 = vector.extract_strided_slice %2 {offsets = [12, 0], sizes = [1, 128], strides = [1, 1]} : vector<16x128xf32> to vector<1x128xf32>
    %37 = vector.shape_cast %36 : vector<1x128xf32> to vector<128xf32>
    %38 = vector.shape_cast %37 : vector<128xf32> to vector<1x128xf32>
    %39 = vector.broadcast %38 : vector<1x128xf32> to vector<80x128xf32>
    %40 = arith.addf %35, %39 : vector<80x128xf32>
    %c0_20 = arith.constant 0 : index
    %c0_21 = arith.constant 0 : index
    %41 = vector.load %arg10[%c0_20, %c0_21] : memref<80x128xf32, #tpu.memory_space<vmem>>, vector<80x128xf32>
    tpu.vector_store %arg10[%c0_20, %c0_21], %40 {strides = array<i32>} : memref<80x128xf32, #tpu.memory_space<vmem>>, vector<80x128xf32>,
    %42 = arith.extui %0 : i1 to i32
    %c0_i32_22 = arith.constant 0 : i32
    %43 = arith.cmpi ne, %42, %c0_i32_22 : i32
    scf.if %43 {
      %cst_47 = arith.constant 0.000000e+00 : f32
      %184 = vector.broadcast %cst_47 : f32 to vector<8x128xf32>
      %c0_48 = arith.constant 0 : index
      %c0_49 = arith.constant 0 : index
      %185 = vector.load %arg10[%c0_48, %c0_49] : memref<80x128xf32, #tpu.memory_space<vmem>>, vector<8x128xf32>
      tpu.vector_store %arg10[%c0_48, %c0_49], %184 {strides = array<i32>} : memref<80x128xf32, #tpu.memory_space<vmem>>, vector<8x128xf32>,
    } else {
    }
    %44 = arith.extui %1 : i1 to i32
    %c0_i32_23 = arith.constant 0 : i32
    %45 = arith.cmpi ne, %44, %c0_i32_23 : i32
    scf.if %45 {
      %cst_47 = arith.constant 0.000000e+00 : f32
      %184 = vector.broadcast %cst_47 : f32 to vector<8x128xf32>
      %c72 = arith.constant 72 : index
      %c0_48 = arith.constant 0 : index
      %185 = vector.load %arg10[%c72, %c0_48] : memref<80x128xf32, #tpu.memory_space<vmem>>, vector<8x128xf32>
      tpu.vector_store %arg10[%c72, %c0_48], %184 {strides = array<i32>} : memref<80x128xf32, #tpu.memory_space<vmem>>, vector<8x128xf32>,
    } else {
    }
    %c0_24 = arith.constant 0 : index
    %c0_25 = arith.constant 0 : index
    %46 = vector.load %arg10[%c0_24, %c0_25] : memref<80x128xf32, #tpu.memory_space<vmem>>, vector<80x128xf32>
    %47 = tpu.iota {dimensions = array<i32: 0>} : vector<80x1xi32>
    %c8_i32 = arith.constant 8 : i32
    %c0_i32_26 = arith.constant 0 : i32
    %48 = arith.cmpi eq, %c8_i32, %c0_i32_26 : i32
    %c1_i32 = arith.constant 1 : i32
    %49 = arith.select %48, %c1_i32, %c8_i32 : i32
    %50 = vector.broadcast %49 : i32 to vector<80x1xi32>
    %51 = arith.remsi %47, %50 : vector<80x1xi32>
    %c0_i32_27 = arith.constant 0 : i32
    %52 = vector.broadcast %c0_i32_27 : i32 to vector<80x1xi32>
    %53 = arith.cmpi ne, %51, %52 : vector<80x1xi32>
    %c0_i32_28 = arith.constant 0 : i32
    %54 = vector.broadcast %c0_i32_28 : i32 to vector<80x1xi32>
    %55 = arith.cmpi slt, %51, %54 : vector<80x1xi32>
    %c0_i32_29 = arith.constant 0 : i32
    %56 = arith.cmpi slt, %49, %c0_i32_29 : i32
    %57 = vector.broadcast %56 : i1 to vector<80x1xi1>
    %58 = vector.broadcast %57 : vector<80x1xi1> to vector<80x1xi1>
    %59 = arith.xori %55, %58 : vector<80x1xi1>
    %60 = arith.andi %59, %53 : vector<80x1xi1>
    %61 = vector.broadcast %49 : i32 to vector<80x1xi32>
    %62 = arith.addi %51, %61 : vector<80x1xi32>
    %63 = arith.select %60, %62, %51 : vector<80x1xi1>, vector<80x1xi32>
    %c0_i32_30 = arith.constant 0 : i32
    %64 = vector.broadcast %c0_i32_30 : i32 to vector<80x1xi32>
    %65 = arith.cmpi eq, %63, %64 : vector<80x1xi32>
    %c1_i32_31 = arith.constant 1 : i32
    %66 = tpu.dynamic_rotate %46 by %c1_i32_31 dim 0 : vector<80x128xf32>, i32 -> vector<80x128xf32>
    %cst_32 = arith.constant 0.000000e+00 : f32
    %67 = vector.shape_cast %65 : vector<80x1xi1> to vector<80x1xi1>
    %68 = vector.broadcast %67 : vector<80x1xi1> to vector<80x128xi1>
    %69 = vector.broadcast %cst_32 : f32 to vector<80x128xf32>
    %70 = arith.select %68, %69, %66 : vector<80x128xi1>, vector<80x128xf32>
    %c7_i32 = arith.constant 7 : i32
    %71 = vector.broadcast %c7_i32 : i32 to vector<80x1xi32>
    %72 = arith.cmpi eq, %63, %71 : vector<80x1xi32>
    %c79_i32 = arith.constant 79 : i32
    %73 = tpu.dynamic_rotate %46 by %c79_i32 dim 0 : vector<80x128xf32>, i32 -> vector<80x128xf32>
    %cst_33 = arith.constant 0.000000e+00 : f32
    %74 = vector.shape_cast %72 : vector<80x1xi1> to vector<80x1xi1>
    %75 = vector.broadcast %74 : vector<80x1xi1> to vector<80x128xi1>
    %76 = vector.broadcast %cst_33 : f32 to vector<80x128xf32>
    %77 = arith.select %75, %76, %73 : vector<80x128xi1>, vector<80x128xf32>
    %78 = arith.truncf %70 : vector<80x128xf32> to vector<80x128xbf16>
    %79 = arith.truncf %46 : vector<80x128xf32> to vector<80x128xbf16>
    %80 = arith.truncf %77 : vector<80x128xf32> to vector<80x128xbf16>
    %cst_34 = arith.constant 0.000000e+00 : bf16
    %81 = vector.broadcast %cst_34 : bf16 to vector<64x128xbf16>
    %82 = vector.extract_strided_slice %2 {offsets = [0, 0], sizes = [1, 128], strides = [1, 1]} : vector<16x128xf32> to vector<1x128xf32>
    %83 = vector.shape_cast %82 : vector<1x128xf32> to vector<128xf32>
    %84 = vector.shape_cast %83 : vector<128xf32> to vector<1x128xf32>
    %85 = arith.truncf %84 : vector<1x128xf32> to vector<1x128xbf16>
    %86 = vector.extract_strided_slice %78 {offsets = [0, 0], sizes = [64, 128], strides = [1, 1]} : vector<80x128xbf16> to vector<64x128xbf16>
    %87 = vector.broadcast %85 : vector<1x128xbf16> to vector<64x128xbf16>
    %88 = arith.mulf %86, %87 : vector<64x128xbf16>
    %89 = arith.addf %81, %88 : vector<64x128xbf16>
    %90 = vector.extract_strided_slice %2 {offsets = [1, 0], sizes = [1, 128], strides = [1, 1]} : vector<16x128xf32> to vector<1x128xf32>
    %91 = vector.shape_cast %90 : vector<1x128xf32> to vector<128xf32>
    %92 = vector.shape_cast %91 : vector<128xf32> to vector<1x128xf32>
    %93 = arith.truncf %92 : vector<1x128xf32> to vector<1x128xbf16>
    %94 = vector.extract_strided_slice %79 {offsets = [0, 0], sizes = [64, 128], strides = [1, 1]} : vector<80x128xbf16> to vector<64x128xbf16>
    %95 = vector.broadcast %93 : vector<1x128xbf16> to vector<64x128xbf16>
    %96 = arith.mulf %94, %95 : vector<64x128xbf16>
    %97 = arith.addf %89, %96 : vector<64x128xbf16>
    %98 = vector.extract_strided_slice %2 {offsets = [2, 0], sizes = [1, 128], strides = [1, 1]} : vector<16x128xf32> to vector<1x128xf32>
    %99 = vector.shape_cast %98 : vector<1x128xf32> to vector<128xf32>
    %100 = vector.shape_cast %99 : vector<128xf32> to vector<1x128xf32>
    %101 = arith.truncf %100 : vector<1x128xf32> to vector<1x128xbf16>
    %102 = vector.extract_strided_slice %80 {offsets = [0, 0], sizes = [64, 128], strides = [1, 1]} : vector<80x128xbf16> to vector<64x128xbf16>
    %103 = vector.broadcast %101 : vector<1x128xbf16> to vector<64x128xbf16>
    %104 = arith.mulf %102, %103 : vector<64x128xbf16>
    %105 = arith.addf %97, %104 : vector<64x128xbf16>
    %106 = vector.extract_strided_slice %2 {offsets = [3, 0], sizes = [1, 128], strides = [1, 1]} : vector<16x128xf32> to vector<1x128xf32>
    %107 = vector.shape_cast %106 : vector<1x128xf32> to vector<128xf32>
    %108 = vector.shape_cast %107 : vector<128xf32> to vector<1x128xf32>
    %109 = arith.truncf %108 : vector<1x128xf32> to vector<1x128xbf16>
    %110 = vector.extract_strided_slice %78 {offsets = [8, 0], sizes = [64, 128], strides = [1, 1]} : vector<80x128xbf16> to vector<64x128xbf16>
    %111 = vector.broadcast %109 : vector<1x128xbf16> to vector<64x128xbf16>
    %112 = arith.mulf %110, %111 : vector<64x128xbf16>
    %113 = arith.addf %105, %112 : vector<64x128xbf16>
    %114 = vector.extract_strided_slice %2 {offsets = [4, 0], sizes = [1, 128], strides = [1, 1]} : vector<16x128xf32> to vector<1x128xf32>
    %115 = vector.shape_cast %114 : vector<1x128xf32> to vector<128xf32>
    %116 = vector.shape_cast %115 : vector<128xf32> to vector<1x128xf32>
    %117 = arith.truncf %116 : vector<1x128xf32> to vector<1x128xbf16>
    %118 = vector.extract_strided_slice %79 {offsets = [8, 0], sizes = [64, 128], strides = [1, 1]} : vector<80x128xbf16> to vector<64x128xbf16>
    %119 = vector.broadcast %117 : vector<1x128xbf16> to vector<64x128xbf16>
    %120 = arith.mulf %118, %119 : vector<64x128xbf16>
    %121 = arith.addf %113, %120 : vector<64x128xbf16>
    %122 = vector.extract_strided_slice %2 {offsets = [5, 0], sizes = [1, 128], strides = [1, 1]} : vector<16x128xf32> to vector<1x128xf32>
    %123 = vector.shape_cast %122 : vector<1x128xf32> to vector<128xf32>
    %124 = vector.shape_cast %123 : vector<128xf32> to vector<1x128xf32>
    %125 = arith.truncf %124 : vector<1x128xf32> to vector<1x128xbf16>
    %126 = vector.extract_strided_slice %80 {offsets = [8, 0], sizes = [64, 128], strides = [1, 1]} : vector<80x128xbf16> to vector<64x128xbf16>
    %127 = vector.broadcast %125 : vector<1x128xbf16> to vector<64x128xbf16>
    %128 = arith.mulf %126, %127 : vector<64x128xbf16>
    %129 = arith.addf %121, %128 : vector<64x128xbf16>
    %130 = vector.extract_strided_slice %2 {offsets = [6, 0], sizes = [1, 128], strides = [1, 1]} : vector<16x128xf32> to vector<1x128xf32>
    %131 = vector.shape_cast %130 : vector<1x128xf32> to vector<128xf32>
    %132 = vector.shape_cast %131 : vector<128xf32> to vector<1x128xf32>
    %133 = arith.truncf %132 : vector<1x128xf32> to vector<1x128xbf16>
    %134 = vector.extract_strided_slice %78 {offsets = [16, 0], sizes = [64, 128], strides = [1, 1]} : vector<80x128xbf16> to vector<64x128xbf16>
    %135 = vector.broadcast %133 : vector<1x128xbf16> to vector<64x128xbf16>
    %136 = arith.mulf %134, %135 : vector<64x128xbf16>
    %137 = arith.addf %129, %136 : vector<64x128xbf16>
    %138 = vector.extract_strided_slice %2 {offsets = [7, 0], sizes = [1, 128], strides = [1, 1]} : vector<16x128xf32> to vector<1x128xf32>
    %139 = vector.shape_cast %138 : vector<1x128xf32> to vector<128xf32>
    %140 = vector.shape_cast %139 : vector<128xf32> to vector<1x128xf32>
    %141 = arith.truncf %140 : vector<1x128xf32> to vector<1x128xbf16>
    %142 = vector.extract_strided_slice %79 {offsets = [16, 0], sizes = [64, 128], strides = [1, 1]} : vector<80x128xbf16> to vector<64x128xbf16>
    %143 = vector.broadcast %141 : vector<1x128xbf16> to vector<64x128xbf16>
    %144 = arith.mulf %142, %143 : vector<64x128xbf16>
    %145 = arith.addf %137, %144 : vector<64x128xbf16>
    %146 = vector.extract_strided_slice %2 {offsets = [8, 0], sizes = [1, 128], strides = [1, 1]} : vector<16x128xf32> to vector<1x128xf32>
    %147 = vector.shape_cast %146 : vector<1x128xf32> to vector<128xf32>
    %148 = vector.shape_cast %147 : vector<128xf32> to vector<1x128xf32>
    %149 = arith.truncf %148 : vector<1x128xf32> to vector<1x128xbf16>
    %150 = vector.extract_strided_slice %80 {offsets = [16, 0], sizes = [64, 128], strides = [1, 1]} : vector<80x128xbf16> to vector<64x128xbf16>
    %151 = vector.broadcast %149 : vector<1x128xbf16> to vector<64x128xbf16>
    %152 = arith.mulf %150, %151 : vector<64x128xbf16>
    %153 = arith.addf %145, %152 : vector<64x128xbf16>
    %154 = arith.extf %153 : vector<64x128xbf16> to vector<64x128xf32>
    %155 = vector.extract_strided_slice %2 {offsets = [9, 0], sizes = [1, 128], strides = [1, 1]} : vector<16x128xf32> to vector<1x128xf32>
    %156 = vector.shape_cast %155 : vector<1x128xf32> to vector<128xf32>
    %157 = vector.shape_cast %156 : vector<128xf32> to vector<1x128xf32>
    %158 = vector.broadcast %157 : vector<1x128xf32> to vector<64x128xf32>
    %159 = arith.addf %154, %158 : vector<64x128xf32>
    %160 = vector.extract_strided_slice %46 {offsets = [8, 0], sizes = [64, 128], strides = [1, 1]} : vector<80x128xf32> to vector<64x128xf32>
    %161 = arith.addf %159, %160 : vector<64x128xf32>
    %cst_35 = arith.constant 5.000000e-01 : f32
    %162 = vector.broadcast %cst_35 : f32 to vector<64x128xf32>
    %163 = arith.mulf %162, %161 : vector<64x128xf32>
    %cst_36 = arith.constant 4.471500e-02 : f32
    %164 = vector.broadcast %cst_36 : f32 to vector<64x128xf32>
    %165 = arith.mulf %164, %161 : vector<64x128xf32>
    %166 = arith.mulf %165, %161 : vector<64x128xf32>
    %167 = arith.mulf %166, %161 : vector<64x128xf32>
    %168 = arith.addf %161, %167 : vector<64x128xf32>
    %cst_37 = arith.constant 0.797884583 : f32
    %169 = vector.broadcast %cst_37 : f32 to vector<64x128xf32>
    %170 = arith.mulf %169, %168 : vector<64x128xf32>
    %171 = math.tanh %170 : vector<64x128xf32>
    %cst_38 = arith.constant 1.000000e+00 : f32
    %172 = vector.broadcast %cst_38 : f32 to vector<64x128xf32>
    %173 = arith.addf %172, %171 : vector<64x128xf32>
    %174 = arith.mulf %163, %173 : vector<64x128xf32>
    %175 = arith.truncf %174 : vector<64x128xf32> to vector<64x128xbf16>
    %c0_39 = arith.constant 0 : index
    %c0_40 = arith.constant 0 : index
    %176 = vector.load %arg7[%c0_39, %c0_40] : memref<128x128xbf16, #tpu.memory_space<vmem>>, vector<128x128xbf16>
    %cst_41 = arith.constant dense<0.000000e+00> : vector<64x128xf32>
    %177 = tpu.matmul %175, %176, %cst_41 {dimension_numbers = #tpu.dot_dimension_numbers<[1], [0], [0], [1], [0, 0, 1, 1], [], []>} : vector<64x128xbf16>, vector<128x128xbf16>, vector<64x128xf32> -> vector<64x128xf32>
    %c0_42 = arith.constant 0 : index
    %c0_43 = arith.constant 0 : index
    %178 = vector.load %arg8[%c0_42, %c0_43] : memref<1x128xf32, #tpu.memory_space<vmem>>, vector<1x128xf32>
    %179 = vector.broadcast %178 : vector<1x128xf32> to vector<64x128xf32>
    %180 = arith.addf %177, %179 : vector<64x128xf32>
    %c0_44 = arith.constant 0 : index
    %c0_45 = arith.constant 0 : index
    %c0_46 = arith.constant 0 : index
    %181 = vector.load %arg9[%c0_44, %c0_45, %c0_46] : memref<1x64x128xf32, #tpu.memory_space<vmem>>, vector<1x64x128xf32>
    %182 = vector.shape_cast %181 : vector<1x64x128xf32> to vector<64x128xf32>
    %183 = vector.shape_cast %180 : vector<64x128xf32> to vector<1x64x128xf32>
    tpu.vector_store %arg9[%c0_44, %c0_45, %c0_46], %183 {strides = array<i32>} : memref<1x64x128xf32, #tpu.memory_space<vmem>>, vector<1x64x128xf32>,
    return
  }
  func.func @transform_0(%arg0: i32, %arg1: i32) -> (i32, i32, i32, i32) {
    %c8_i32 = arith.constant 8 : i32
    %0 = arith.muli %arg1, %c8_i32 : i32
    %c1_i32 = arith.constant 1 : i32
    %1 = arith.subi %0, %c1_i32 : i32
    %c0_i32 = arith.constant 0 : i32
    %2 = arith.maxsi %1, %c0_i32 : i32
    %c0_i32_0 = arith.constant 0 : i32
    %c0_i32_1 = arith.constant 0 : i32
    %c0_i32_2 = arith.constant 0 : i32
    return %arg0, %2, %c0_i32_0, %c0_i32_1 : i32, i32, i32, i32
  }
  func.func @transform_1(%arg0: i32, %arg1: i32) -> (i32, i32, i32, i32) {
    %c0_i32 = arith.constant 0 : i32
    %c0_i32_0 = arith.constant 0 : i32
    %c0_i32_1 = arith.constant 0 : i32
    return %arg0, %arg1, %c0_i32, %c0_i32_0 : i32, i32, i32, i32
  }
  func.func @transform_2(%arg0: i32, %arg1: i32) -> (i32, i32, i32, i32) {
    %c1_i32 = arith.constant 1 : i32
    %0 = arith.addi %arg1, %c1_i32 : i32
    %c8_i32 = arith.constant 8 : i32
    %1 = arith.muli %0, %c8_i32 : i32
    %c7_i32 = arith.constant 7 : i32
    %2 = arith.minsi %1, %c7_i32 : i32
    %c0_i32 = arith.constant 0 : i32
    %c0_i32_0 = arith.constant 0 : i32
    %c0_i32_1 = arith.constant 0 : i32
    return %arg0, %2, %c0_i32, %c0_i32_0 : i32, i32, i32, i32
  }
  func.func @transform_3(%arg0: i32, %arg1: i32) -> (i32, i32) {
    %c0_i32 = arith.constant 0 : i32
    %c0_i32_0 = arith.constant 0 : i32
    %c0_i32_1 = arith.constant 0 : i32
    return %c0_i32, %c0_i32_0 : i32, i32
  }
  func.func @transform_4(%arg0: i32, %arg1: i32) -> (i32, i32) {
    %c0_i32 = arith.constant 0 : i32
    %c0_i32_0 = arith.constant 0 : i32
    %c0_i32_1 = arith.constant 0 : i32
    return %c0_i32, %c0_i32_0 : i32, i32
  }
  func.func @transform_5(%arg0: i32, %arg1: i32) -> (i32, i32) {
    %c0_i32 = arith.constant 0 : i32
    %c0_i32_0 = arith.constant 0 : i32
    %c0_i32_1 = arith.constant 0 : i32
    return %c0_i32, %c0_i32_0 : i32, i32
  }
  func.func @transform_6(%arg0: i32, %arg1: i32) -> (i32, i32) {
    %c0_i32 = arith.constant 0 : i32
    %c0_i32_0 = arith.constant 0 : i32
    %c0_i32_1 = arith.constant 0 : i32
    return %c0_i32, %c0_i32_0 : i32, i32
  }
  func.func @transform_7(%arg0: i32, %arg1: i32) -> (i32, i32, i32) {
    %c0_i32 = arith.constant 0 : i32
    %c0_i32_0 = arith.constant 0 : i32
    return %arg0, %arg1, %c0_i32 : i32, i32, i32
  }
}

</mosaic_0001>

<bundles_post_ra>
// kernel: tpu_custom_call.1
= control target key start
LH: loop header
LB: loop body
LE: loop exit
PB: predicated region body
PF: predicated region fallthrough
CT: control target
= control target key end

     0   :  { %s3193_s0 = inlined_call_operand.hbm [shape: bf16[2,8,8,128], index: 0, kind: input, shape index: {}]   ;;  %s3194_s1 = inlined_call_operand.hbm [shape: bf16[2,8,8,128], index: 1, kind: input, shape index: {}]   ;;  %s3195_s2 = inlined_call_operand.hbm [shape: bf16[2,8,8,128], index: 2, kind: input, shape index: {}]   ;;  %s3196_s3 = inlined_call_operand.hbm [shape: bf16[128,128], index: 3, kind: input, shape index: {}]   ;;  %s3197_s4 = inlined_call_operand.hbm [shape: f32[16,128], index: 4, kind: input, shape index: {}]   ;;  %s3198_s5 = inlined_call_operand.hbm [shape: bf16[128,128], index: 5, kind: input, shape index: {}]   ;;  %s3199_s6 = inlined_call_operand.vmem [shape: f32[1,128], index: 6, kind: input, shape index: {}]   ;;  %s3200_s7 = inlined_call_operand.hbm [shape: f32[2,64,128], index: 7, kind: output, shape index: {}]  }
   0x1   :  { %3216 = sst [smem:[#allocation25_spill]] %s3194_s1 }
   0x2   :  { %3217 = sst [smem:[#allocation26_spill]] %s3196_s3 }
   0x3   :  { %3218 = sst [smem:[#allocation27_spill]] %s3200_s7 }
   0x4   :  { %12 = vsyncpa [#allocation4], 0 }
   0x5   :  { %14 = vsyncpa [#allocation4 + $0x1], 0 }
   0x6   :  { %15 = vsyncpa [#allocation7], 0 }
   0x7   :  { %17 = vsyncpa [#allocation7 + $0x1], 0 }
   0x8   :  { %18 = vsyncpa [#allocation10], 0 }
   0x9   :  { %19 = vsyncpa [#allocation13], 0 }
   0xa   :  { %20 = vsyncpa [#allocation5], 0 }
   0xb   :  { %22 = vsyncpa [#allocation5 + $0x1], 0  ;;  %s2297_s24 = smov 0   ;;  %s2299_s25 = smov 0  }
   0xc   :  { %s2301_s26 = smov 0   ;;  %s2303_s27 = smov 0  }
   0xd   :  { %s2305_s28 = smov 0   ;;  %s2307_s29 = smov 0  }
   0xe LB: > { %3219 = sst [smem:[#allocation20_spill]] %s2220_s24  ;;  %s2328_s30 = sadd.s32 4294967295, %s2240_s29   ;;  %s2240_s29 = sphi %s2307_s29, %s28_s29   ;;  %s2236_s28 = sphi %s2305_s28, %s3298_s28   ;;  %s2232_s27 = sphi %s2303_s27, %s3297_s27   ;;  %s2228_s26 = sphi %s2301_s26, %s3301_s26   ;;  %s2224_s25 = sphi %s2299_s25, %s3300_s25   ;;  %s2220_s24 = sphi %s2297_s24, %s3299_s24  }
   0xf   : > { %3220 = sst [smem:[#allocation21_spill]] %s2236_s28  ;;  %s1679_s8 = sadd.s32 4294967294, %s2240_s29  }
  0x10   : > { %p64_p0 = scmp.ne.s32.totalorder %s2228_s26, %s2224_s25  ;;  %p65_p1 = scmp.eq.s32.totalorder %s2240_s29, 0 }
  0x11   : > { %p70_p2 = scmp.ne.s32.totalorder %s2224_s25, %s2220_s24  ;;  %p3201_p3 = scmp.eq.s32.totalorder %s2328_s30, 0 }
  0x12   : > { %p2337_p4 = por %p65_p1, %p64_p0  ;;  %p244_p5 = scmp.eq.s32.totalorder %s2328_s30, 1 }
  0x13   : > { %p2344_p6 = por %p3201_p3, %p70_p2  ;;  %p250_p7 = scmp.eq.s32.totalorder %s1679_s8, 1 }
  0x14   : > { %p2348_p8 = por %p244_p5, %p64_p0  ;;  %p1680_p9 = scmp.ge.s32.totalorder %s2240_s29, 1 }
  0x15   : > { %s3222_s10 = scalar_select %p2344_p6, 1, 0 }
  0x16   : > { %s3223_s11 = scalar_select %p2348_p8, 1, 0 }
  0x17   : > { %p2353_p10 = por %p250_p7, %p70_p2  ;;  %p257_p11 = scmp.lt.s32.totalorder %s2240_s29, 3 }
  0x18   : > { %s2242_s14 = smov [#allocation9]   ;;  %s40_s17 = sadd.s32 1, %s2236_s28 }
  0x19   : > { %s3224_s12 = scalar_select %p2353_p10, 1, 0 }
  0x1a   : > { %p2358_p12 = pnand %p1680_p9, %p257_p11  ;;  %s269_s15 = sshll.u32 %s2242_s14, 4  ;;  %s270_s15 = int_to_ptr.vmem [resolvable:$true] %s269_s15 }
  0x1b   : > { %3225 = sst [smem:[#allocation22_spill]] %s3224_s12  ;;  %s57_s18 = sadd.s32 1, %s2228_s26 }
  0x1c   : > { %p1841_p13 = pneg %p2358_p12  ;;  %p2373_p2 = scmp.ge.s32.totalorder %s40_s17, 2 }
  0x1d   : > { %s1997_s20 = scalar_lea.vmem %s270_s15, 1024 }
  0x1e   : > { %p2367_p1 = pnand %p1841_p13, %p3201_p3  ;;  %p1998_p7 = scmp.ne.s32.totalorder %s270_s15, %s1997_s20 }
  0x1f   : > { %p2005_p13 = scmp.lt.s32.totalorder %s270_s15, %s270_s15  ;;  %p2006_p0 = scmp.lt.s32.totalorder %s1997_s20, %s1997_s20 }
  0x20   : > { %p1988_p5 = pneg %p2367_p1 }
  0x21   : > { %p2007_p3 = por %p2006_p0, %p2005_p13 }
  0x22   : > { %p2000_p9 = pnand %p1998_p7, %p1988_p5 }
  0x24   : > { %p2001_p11 = pneg %p2000_p9 }
  0x26   : > { %p2008_p10 = pnand %p2007_p3, %p2001_p11 }
  0x28   : > { %2011 = shalt.err (!%p2008_p10)
}
  0x29   : > { %s3204_s21 = smov 64   ;;  %s3206_s22 = smov 4  }
  0x2a   : > { %s3229_s3 = sld [smem:[#allocation26_spill]]  ;;  %s3303_s17 = smov (%p2373_p2, %s40_s17), 0 }
  0x2b   : > { %3230 = sst [smem:[#allocation23_spill]] %s3303_s17  ;;  %p1868_p3 = scmp.lt.s32.totalorder %s2240_s29, 2 }
  0x2c   : > { %s2396_s14 = sand.u32 1, %s2228_s26   ;;  %s52_s20 = ssub.s32 %s2236_s28, %s3303_s17 }
  0x2d   : > { %s2401_s12 = sshll.u32 %s2236_s28, 9  ;;  %p55_p10 = scmp.eq.s32.totalorder %s52_s20, 0 }
  0x2e   : > { %p2405_p0 = pnand %p1868_p3, %p2337_p4  ;;  %s1688_s19 = sshll.u32 %s2396_s14, 5 }
  0x2f   : > { %s2412_s23 = scalar_select %p55_p10, %s2228_s26, %s57_s18  }
  0x30   : > { %1844 = dma.hbm_to_vmem [thread:$0]  (!%p2367_p1), %s3229_s3, 1024, %s270_s15, [#allocation10], %s3204_s21, %s3204_s21, %s3206_s22  }
  0x31   : > { %s336_s15 = sand.u32 1, %s2240_s29   ;;  %3232 = sst [smem:[#allocation24_spill]] %s2412_s23 }
  0x32   : > { %s3233_s1 = sld [smem:[#allocation25_spill]]  ;;  %s340_s3 = scalar_lea.vmem [#allocation6], %s1688_s19 }
  0x33   : > { %s349_s17 = sshll.u32 %s340_s3, 4  ;;  %s2245_s28 = smov [#allocation11]   ;;  %s350_s17 = int_to_ptr.vmem [resolvable:$true] %s349_s17 }
  0x34   : > { %s282_s20 = sshll.u32 %s2245_s28, 4  ;;  %s2418_s9 = scalar_lea.sflag [#allocation7], %s336_s15  ;;  %s283_s20 = int_to_ptr.vmem [resolvable:$true] %s282_s20 }
  0x35   : > { %p3211_p4 = pneg %p2405_p0  ;;  %s2025_s7 = scalar_lea.vmem %s350_s17, 512 }
  0x36   : > { %p2026_p2 = scmp.ne.s32.totalorder %s350_s17, %s2025_s7  ;;  %s2246_s18 = smov [#allocation6]  }
  0x37   : > { %s2030_s23 = sshll.u32 %s2246_s18, 4  ;;  %s2031_s23 = int_to_ptr.vmem [resolvable:$false] %s2030_s23 }
  0x38   : > { %s348_s22 = scalar_lea.hbm %s3233_s1, %s2401_s12  ;;  %p2028_p7 = pnand %p2026_p2, %p3211_p4 }
  0x39   : > { %s2032_s21 = scalar_lea.vmem %s2031_s23, 1024  ;;  %p2033_p11 = scmp.lt.s32.totalorder %s350_s17, %s2031_s23 }
  0x3a   : > { %p2029_p9 = pneg %p2028_p7  ;;  %p2034_p13 = scmp.lt.s32.totalorder %s2032_s21, %s2025_s7 }
  0x3c   : > { %p2035_p3 = por %p2034_p13, %p2033_p11 }
  0x3e   : > { %p2036_p10 = pnand %p2035_p3, %p2029_p9 }
  0x40   : > { %2039 = shalt.err (!%p2036_p10)
}
  0x41   : > { %s3234_s3 = smov 4   ;;  %s3235_s28 = smov 64  }
  0x42   : > { %1857 = dma.hbm_to_vmem [thread:$0]  (!%p2405_p0), %s348_s22, 512, %s350_s17, %s2418_s9, %s3235_s28, %s3235_s28, %s3234_s3  }
  0x43   : > { %s2051_s15 = scalar_lea.vmem %s283_s20, 256  ;;  %p2059_p8 = scmp.lt.s32.totalorder %s283_s20, %s283_s20 }
  0x44   : > { %p2052_p2 = scmp.ne.s32.totalorder %s283_s20, %s2051_s15  ;;  %p2060_p6 = scmp.lt.s32.totalorder %s2051_s15, %s2051_s15 }
  0x46   : > { %p2054_p7 = pnand %p2052_p2, %p1988_p5  ;;  %p2061_p11 = por %p2060_p6, %p2059_p8 }
  0x48   : > { %p2055_p4 = pneg %p2054_p7 }
  0x4a   : > { %p2062_p9 = pnand %p2061_p11, %p2055_p4 }
  0x4c   : > { %2065 = shalt.err (!%p2062_p9)
}
  0x4d   : > { %s2247_s7 = smov 128   ;;  %s2248_s19 = smov 8  }
  0x4e   : > { %1847 = dma.hbm_to_vmem [thread:$0]  (!%p2367_p1), %s3197_s4, 256, %s283_s20, [#allocation10], %s2247_s7, %s2247_s7, %s2248_s19  }
  0x4f   : > { %s2249_s22 = smov [#allocation12]   ;;  %s1685_s18 = sshll.u32 %s2396_s14, 2 }
  0x50   : > { %s295_s8 = sshll.u32 %s2249_s22, 4  ;;  %s296_s8 = int_to_ptr.vmem [resolvable:$true] %s295_s8 }
  0x51   : > { %s2077_s21 = scalar_lea.vmem %s296_s8, 1024  ;;  %p2085_p4 = scmp.lt.s32.totalorder %s296_s8, %s296_s8 }
  0x52   : > { %p2078_p13 = scmp.ne.s32.totalorder %s296_s8, %s2077_s21  ;;  %p2086_p3 = scmp.lt.s32.totalorder %s2077_s21, %s2077_s21 }
  0x54   : > { %p2080_p6 = pnand %p2078_p13, %p1988_p5  ;;  %p2087_p10 = por %p2086_p3, %p2085_p4 }
  0x56   : > { %p2081_p8 = pneg %p2080_p6 }
  0x58   : > { %p2088_p2 = pnand %p2087_p10, %p2081_p8 }
  0x5a   : > { %2091 = shalt.err (!%p2088_p2)
}
  0x5b   : > { %1850 = dma.hbm_to_vmem [thread:$0]  (!%p2367_p1), %s3198_s5, 1024, %s296_s8, [#allocation13], %s3235_s28, %s3235_s28, %s3234_s3  }
  0x5c   : > { %s327_s23 = scalar_lea.hbm %s3193_s0, %s2401_s12  ;;  %s316_s17 = scalar_lea.vmem [#allocation3], %s1685_s18 }
  0x5d   : > { %s329_s22 = sshll.u32 %s316_s17, 4  ;;  %s1733_s16 = sadd.s32 448, %s2401_s12  ;;  %s330_s22 = int_to_ptr.vmem [resolvable:$true] %s329_s22 }
  0x5e   : > { %s313_s21 = scalar_lea.sflag [#allocation4], %s2396_s14  ;;  %s2105_s1 = scalar_lea.vmem %s330_s22, 64 }
  0x5f   : > { %p2106_p5 = scmp.ne.s32.totalorder %s330_s22, %s2105_s1  ;;  %p3236_p7 = pneg %p2405_p0 }
  0x60   : > { %s2250_s20 = smov [#allocation3]  }
  0x61   : > { %p2108_p11 = pnand %p2106_p5, %p3236_p7  ;;  %s2110_s15 = sshll.u32 %s2250_s20, 4  ;;  %s2111_s15 = int_to_ptr.vmem [resolvable:$false] %s2110_s15 }
  0x62   : > { %s2112_s3 = scalar_lea.vmem %s2111_s15, 128  ;;  %p2113_p1 = scmp.lt.s32.totalorder %s330_s22, %s2111_s15 }
  0x63   : > { %p2109_p9 = pneg %p2108_p11  ;;  %p2114_p13 = scmp.lt.s32.totalorder %s2112_s3, %s2105_s1 }
  0x65   : > { %p2115_p6 = por %p2114_p13, %p2113_p1 }
  0x67   : > { %p2116_p8 = pnand %p2115_p6, %p2109_p9 }
  0x69   : > { %2119 = shalt.err (!%p2116_p8)
}
  0x6a   : > { %1854 = dma.hbm_to_vmem [thread:$0]  (!%p2405_p0), %s327_s23, 64, %s330_s22, %s313_s21  }
  0x6b   : > { %s374_s8 = scalar_lea.hbm %s3195_s2, %s1733_s16  ;;  %s363_s7 = scalar_lea.vmem [#allocation8], %s1685_s18 }
  0x6c   : > { %s376_s19 = sshll.u32 %s363_s7, 4  ;;  %p3237_p3 = pmov %p3236_p7  ;;  %s377_s19 = int_to_ptr.vmem [resolvable:$true] %s376_s19 }
  0x6d   : > { %s2133_s17 = scalar_lea.vmem %s377_s19, 64  ;;  %s2251_s1 = smov [#allocation8]  }
  0x6e   : > { %p2134_p4 = scmp.ne.s32.totalorder %s377_s19, %s2133_s17  ;;  %s2138_s20 = sshll.u32 %s2251_s1, 4  ;;  %s2139_s20 = int_to_ptr.vmem [resolvable:$false] %s2138_s20 }
  0x6f   : > { %s2140_s15 = scalar_lea.vmem %s2139_s20, 128  ;;  %p2141_p5 = scmp.lt.s32.totalorder %s377_s19, %s2139_s20 }
  0x70   : > { %p2136_p10 = pnand %p2134_p4, %p3237_p3  ;;  %p2142_p7 = scmp.lt.s32.totalorder %s2140_s15, %s2133_s17 }
  0x72   : > { %p2137_p2 = pneg %p2136_p10  ;;  %p2143_p11 = por %p2142_p7, %p2141_p5 }
  0x74   : > { %p2144_p9 = pnand %p2143_p11, %p2137_p2 }
  0x76   : > { %2147 = shalt.err (!%p2144_p9)
}
  0x77   : > { %1860 = dma.hbm_to_vmem [thread:$0]  (!%p2405_p0), %s374_s8, 64, %s377_s19, %s2418_s9  }
  0x78   : > { %385 = sbr.rel (%p2358_p12) target bundleno = 718 (0x2ce), region = 48  ;;  %s2478_s14 = sand.u32 (!%p2358_p12), 1, %s2224_s25  }
  0x79   : > { %s1695_s18 = sshll.u32 (!%p2358_p12), %s2478_s14, 2  ;;  %s388_s23 = scalar_lea.sflag (!%p2358_p12), [#allocation4], %s2478_s14 }
  0x7a   : > { %s2482_s22 = scalar_lea.vmem (!%p2358_p12), [#allocation3], %s1695_s18  ;;  %p3238_p1 = scmp.ne.s32.totalorder (!%p2358_p12), %s3222_s10, 0 }
  0x7d   : > { %2199 = dma.done.wait (%p3238_p1), %s388_s23, 64  }
  0x7e   : > { %2201 = vsyncadd (%p3238_p1), %s388_s23, 4294967232  ;;  %s396_s24 = sand.u32 1, %s2328_s30   ;;  %s1696_s13 = sshll.u32 %s2478_s14, 5 }
  0x7f   : > { %s397_s9 = scalar_lea.sflag [#allocation7], %s396_s24  ;;  %s2490_s16 = scalar_lea.vmem [#allocation6], %s1696_s13 }
  0x80   : > { %2203 = dma.done.wait (%p3238_p1), %s397_s9, 576  }
  0x81   : > { %2205 = vsyncadd (%p3238_p1), %s397_s9, 4294966720  ;;  %s2496_s21 = scalar_lea.vmem [#allocation8], %s1695_s18  ;;  %p3239_p12 = scmp.eq.s32.totalorder %s2328_s30, 0 }
  0x83   : > { %2207 = dma.done.wait (%p3239_p12), [#allocation10], 1280   ;;  %p3240_p0 = pmov %p3239_p12 }
  0x85   : > { %2209 = vsyncadd (%p3240_p0), [#allocation10], 4294966016  ;;  %p3241_p13 = pmov %p3240_p0 }
  0x86   : > { %p3242_p6 = pmov %p3240_p0 }
  0x87   : > { %2211 = dma.done.wait (%p3241_p13), [#allocation13], 1024  }
  0x88   : > { %2213 = vsyncadd (%p3242_p6), [#allocation13], 4294966272  ;;  %v3214_v0 = vmov 0.0   ;;  %vm2253_vm0 = vmmov 0   ;;  %v1932_v1 = vld [vmem:[#allocation9 + $0x38] sm:$0xff]   ;;  %v1933_v2 = vld [vmem:[#allocation9 + $0x30] sm:$0xff]   ;;  %v538_v25 = vlaneseq }
  0x89   : > { %1761 = vmatprep.subr.bf16.mxu0 %v3214_v0  ;;  %1777 = vmatprep.mubr.msk.bf16.mxu0 %vm2253_vm0, %v3214_v0  ;;  %v1934_v3 = vld [vmem:[#allocation9 + $0x28] sm:$0xff]   ;;  %v1935_v4 = vld [vmem:[#allocation9 + $0x20] sm:$0xff]   ;;  %v1936_v5 = vld [vmem:[#allocation9 + $0x18] sm:$0xff]   ;;  %vm513_vm1 = vcmask 1043456   ;;  %s1701_s30 = sshll.u32 %s2478_s14, 6  ;;  %s1734_s8 = sshll.u32 %s2232_s27, 10 }
  0x8a   : > { %1762 = vmatpush3.bf16.msra.mxu0 %v1932_v1  ;;  %v1937_v6 = vld [vmem:[#allocation9 + $0x10] sm:$0xff]   ;;  %v1938_v7 = vld [vmem:[#allocation9 + $0x8] sm:$0xff]   ;;  %v1939_v8 = vld [vmem:[#allocation9] sm:$0xff]   ;;  %v2533_v27 = vshrl.u32 %v538_v25, 7  ;;  %s461_s12 = scalar_lea.vmem [#allocation14], %s1701_s30  ;;  %s3290_s17 = sld [smem:[#allocation27_spill]] }
  0x8b   : > { %1763 = vmatprep.subr.bf16.mxu0 %v3214_v0  ;;  %v1940_v9 = vld [vmem:[%s2490_s16] ss:$0 sps:$4 sm:$0xff]   ;;  %v476_v10 = vld [vmem:[%s2482_s22] sm:$0xf]  ;;  %v1941_v12 = vld [vmem:[%s2490_s16 + $0x4] sm:$0xff]   ;;  %s1515_s28 = sshll.u32 %s461_s12, 4  ;;  %s3140_s28 = int_to_ptr.vmem [resolvable:$true] %s1515_s28 }
  0x8c   : > { %v516_v11 = vsel %vm513_vm1, %v476_v10, %v1940_v9  ;;  %v1942_v13 = vld [vmem:[%s2490_s16 + $0xc] sm:$0xff]   ;;  %v1943_v14 = vld [vmem:[%s2490_s16 + $0x14] sm:$0xff]   ;;  %v1944_v15 = vld [vmem:[%s2490_s16 + $0x1c] ss:$0 sps:$4 sm:$0xff]   ;;  %v2536_v28 = vsub.s32 2, %v2533_v27  ;;  %v2560_v49 = vsub.s32 3, %v2533_v27 }
  0x8d   : > { %v1945_v16 = vld [vmem:[%s2496_s21] ss:$0 sps:$4 sm:$0xff]   ;;  %v1946_v18 = vld [vmem:[#allocation12 + $0x38] sm:$0xff]   ;;  %v1947_v19 = vld [vmem:[#allocation12 + $0x30] sm:$0xff]   ;;  %v769_v55 = vsub.s32 4, %v2533_v27  ;;  %v821_v56 = vand.u32 7, %v2533_v27 }
  0x8e   : > { %1764 = vmatpush3.bf16.msra.mxu0 %v1933_v2  ;;  %v520_v17 = vsel %vm513_vm1, %v1944_v15, %v1945_v16  ;;  %1797 = vmatprep.subr.bf16.mxu1 %v1946_v18  ;;  %v1948_v20 = vld [vmem:[#allocation12 + $0x28] sm:$0xff]   ;;  %v1949_v21 = vld [vmem:[#allocation12 + $0x20] sm:$0xff]   ;;  %v1950_v22 = vld [vmem:[#allocation12 + $0x18] sm:$0xff]   ;;  %v2576_v62 = vadd.s32 8, %v2533_v27  ;;  %v2579_v63 = vsub.s32 0, %v2533_v27  ;;  %v2604_v15 = vrot.slane %v3214_v0, 1 }
  0x8f   : > { %1765 = vmatprep.subr.bf16.mxu0 %v3214_v0  ;;  %1798 = vmatpush3.bf16.msra.mxu1 %v1946_v18  ;;  %v1951_v23 = vld [vmem:[#allocation12 + $0x10] sm:$0xff]   ;;  %v1952_v24 = vld [vmem:[#allocation12 + $0x8] sm:$0xff]   ;;  %v1953_v26 = vld [vmem:[#allocation12] sm:$0xff]   ;;  %vm2588_vm2 = vcmp.eq.s32.totalorder %v821_v56, 0  ;;  %v1107_v16 = vsub.s32 1, %v2533_v27  ;;  %vm957_vm3 = vcmp.lt.s32.totalorder %v2533_v27, 1 }
  0x90   : > { %1799 = vmatprep.subr.bf16.mxu1 %v1947_v19  ;;  %v2538_v29 = vld [vmem:[#allocation11 + $0x8] sm:$0xff]  ;;  %v474_v37 = vld [vmem:[#allocation11] sm:$0xff]  ;;  %vm1018_vm5 = vcmp.lt.s32.totalorder %v2533_v27, 7  ;;  %vm2699_vm6 = vcmp.eq.s32.totalorder %v821_v56, 7  ;;  %s3145_s1 = scalar_lea.hbm %s3290_s17, %s1734_s8  ;;  %s1500_s20 = scalar_lea.sflag [#allocation5], %s2478_s14 }
  0x91   : > { %v2542_v31 = vrot.slane %v2538_v29, %v2536_v28  ;;  %v1074_v43 = vpack.c.bf16 %v474_v37, %v474_v37  ;;  %v2573_v61 = vrot.slane %v2538_v29, %v2560_v49  ;;  %s2148_s15 = scalar_lea.vmem %s3140_s28, 1024  ;;  %p3291_p4 = scmp.ne.s32.totalorder %s3223_s11, 0 }
  0x92   : > { %1766 = vmatpush3.bf16.msra.mxu0 %v1934_v3  ;;  %p2149_p8 = scmp.ne.s32.totalorder %s3140_s28, %s2148_s15  ;;  %s2254_s27 = smov [#allocation14]  }
  0x93   : > { %1767 = vmatprep.subr.bf16.mxu0 %v3214_v0  ;;  %1800 = vmatpush3.bf16.msra.mxu1 %v1947_v19  ;;  %v1090_v52 = vshrl.u32 %v1074_v43, 16  ;;  %v2595_v9 = vpack.i.b16 %v1074_v43, %v1074_v43  ;;  %s2152_s18 = sshll.u32 %s2254_s27, 4  ;;  %s2153_s18 = int_to_ptr.vmem [resolvable:$false] %s2152_s18 }
  0x94   : > { %1801 = vmatprep.subr.bf16.mxu1 %v1948_v20  ;;  %p2150_p3 = pnand %p2149_p8, %p3291_p4  ;;  %s2154_s23 = scalar_lea.vmem %s2153_s18, 2048 }
  0x95   : > { %v1091_v2 = vpack.i.b16 %v1090_v52, %v1090_v52  ;;  %v2624_v25 = vrot.slane %v2595_v9, %v2536_v28  ;;  %p2155_p2 = scmp.lt.s32.totalorder %s3140_s28, %s2153_s18  ;;  %p2156_p5 = scmp.lt.s32.totalorder %s2154_s23, %s2148_s15 }
  0x96   : > { %1768 = vmatpush3.bf16.msra.mxu0 %v1935_v4  ;;  %p2151_p10 = pneg %p2150_p3 }
  0x97   : > { %1769 = vmatprep.subr.bf16.mxu0 %v3214_v0  ;;  %1802 = vmatpush3.bf16.msra.mxu1 %v1948_v20  ;;  %v2611_v19 = vrot.slane %v1091_v2, %v2579_v63  ;;  %v2637_v37 = vrot.slane %v1091_v2, %v2536_v28  ;;  %p2157_p7 = por %p2156_p5, %p2155_p2 }
  0x98   : > { %1803 = vmatprep.subr.bf16.mxu1 %v1949_v21 }
  0x99   : > { %p2158_p11 = pnand %p2157_p7, %p2151_p10 }
  0x9a   : > { %1770 = vmatpush3.bf16.msra.mxu0 %v1936_v5 }
  0x9b   : > { %1771 = vmatprep.subr.bf16.mxu0 %v3214_v0  ;;  %1804 = vmatpush3.bf16.msra.mxu1 %v1949_v21 }
  0x9c   : > { %1805 = vmatprep.subr.bf16.mxu1 %v1950_v22 }
  0x9e   : > { %1772 = vmatpush3.bf16.msra.mxu0 %v1937_v6  ;;  %v2584_v6 = vrot.slane %v2538_v29, %v769_v55 }
  0x9f   : > { %1773 = vmatprep.subr.bf16.mxu0 %v3214_v0  ;;  %1806 = vmatpush3.bf16.msra.mxu1 %v1950_v22 }
  0xa0   : > { %1807 = vmatprep.subr.bf16.mxu1 %v1951_v23 }
  0xa2   : > { %1774 = vmatpush3.bf16.msra.mxu0 %v1938_v7 }
  0xa3   : > { %1775 = vmatprep.subr.bf16.mxu0 %v3214_v0  ;;  %1808 = vmatpush3.bf16.msra.mxu1 %v1951_v23 }
  0xa4   : > { %1809 = vmatprep.subr.bf16.mxu1 %v1952_v24 }
  0xa6   : > { %1776 = vmatpush3.bf16.msra.mxu0 %v1939_v8  ;;  %v2593_v8 = vrot.slane %v3214_v0, 7 }
  0xa7   : > { %1810 = vmatpush3.bf16.msra.mxu1 %v1952_v24  ;;  %v2620_v24 = vrot.slane %v2595_v9, %v2579_v63 }
  0xa8   : > { %1811 = vmatprep.subr.bf16.mxu1 %v1953_v26  ;;  %v988_v23 = vsel %vm2588_vm2, 0.0, %v2593_v8 }
  0xa9   : > { %1778 = vmatmul.mubr.bf16.vlgmr.msra.gmra.mxu0 %v516_v11 }
  0xaa   : > { %1781 = vmatprep.mubr.msk.bf16.mxu0 %vm2253_vm0, %v3214_v0 }
  0xab   : > { %1812 = vmatpush3.bf16.msra.mxu1 %v1953_v26  ;;  %v2627_v26 = vadd.s32 24, %v2533_v27 }
  0xad   : > { %v842_v28 = vand.u32 7, %v2627_v26 }
  0xaf   : > { %vm2744_vm10 = vcmp.eq.s32.totalorder %v842_v28, 0  ;;  %vm2779_vm11 = vcmp.eq.s32.totalorder %v842_v28, 7 }
  0xb1   : > { %1782 = vmatmul.mubr.bf16.gmra.mxu0 %v1941_v12 }
  0xb2   : > { %1785 = vmatprep.mubr.msk.bf16.mxu0 %vm2253_vm0, %v3214_v0 }
  0xb9   : > { %1786 = vmatmul.mubr.bf16.gmra.mxu0 %v1942_v13 }
  0xba   : > { %1789 = vmatprep.mubr.msk.bf16.mxu0 %vm2253_vm0, %v3214_v0 }
  0xc1   : > { %1790 = vmatmul.mubr.bf16.gmra.mxu0 %v1943_v14  ;;  %v828_v14 = vand.u32 7, %v2576_v62 }
  0xc2   : > { %1793 = vmatprep.mubr.msk.bf16.mxu0 %vm2253_vm0, %v3214_v0 }
  0xc3   : > { %vm2676_vm4 = vcmp.eq.s32.totalorder %v828_v14, 0  ;;  %vm2705_vm7 = vcmp.eq.s32.totalorder %v828_v14, 7 }
  0xc9   : > { %1794 = vmatmul.mubr.bf16.gmra.mxu0 %v520_v17  ;;  %v2608_v17 = vadd.s32 16, %v2533_v27 }
 0x169   : > { %v624_v30 = vpop.f32.mrf.mxu0 }
 0x16b   : > { %v1779_v32 = vpop.f32.mrf.mxu0 }
 0x16d   : > { %v627_v33 = vpop.f32.mrf.mxu0 }
 0x16e   : > { %v2545_v34 = vadd.f32 %v627_v33, %v2542_v31 }
 0x16f   : > { %v1780_v35 = vpop.f32.mrf.mxu0 }
 0x170   : > { %v674_v36 = vmul.f32 0.044715, %v2545_v34 }
 0x171   : > { %v632_v38 = vpop.f32.mrf.mxu0 }
 0x172   : > { %v684_v39 = vmul.f32 %v674_v36, %v2545_v34  ;;  %v2550_v40 = vadd.f32 %v632_v38, %v2542_v31  ;;  %v2634_v36 = vrot.slane %v1091_v2, %v1107_v16  ;;  %v835_v38 = vand.u32 7, %v2608_v17 }
 0x173   : > { %v1783_v41 = vpop.f32.mrf.mxu0 }
 0x174   : > { %v694_v42 = vmul.f32 %v684_v39, %v2545_v34  ;;  %v675_v44 = vmul.f32 0.044715, %v2550_v40  ;;  %v2641_v39 = vadd.s32 32, %v2533_v27  ;;  %vm2726_vm9 = vcmp.eq.s32.totalorder %v835_v38, 0 }
 0x175   : > { %v635_v45 = vpop.f32.mrf.mxu0  ;;  %vm2798_vm12 = vcmp.eq.s32.totalorder %v835_v38, 7 }
 0x176   : > { %v704_v46 = vadd.f32 %v694_v42, %v2545_v34  ;;  %v685_v47 = vmul.f32 %v675_v44, %v2550_v40  ;;  %v2557_v48 = vadd.f32 %v635_v45, %v2542_v31  ;;  %v2644_v42 = vrot.slane %v2595_v9, %v1107_v16 }
 0x177   : > { %v1784_v50 = vpop.f32.mrf.mxu0 }
 0x178   : > { %v714_v51 = vmul.f32 0.7978846, %v704_v46  ;;  %v695_v53 = vmul.f32 %v685_v47, %v2550_v40  ;;  %v676_v54 = vmul.f32 0.044715, %v2557_v48  ;;  %v2649_v46 = vrot.slane %v2538_v29, %v1107_v16 }
 0x179   : > { %v640_v57 = vpop.f32.mrf.mxu0  ;;  %v2653_v47 = vadd.s32 40, %v2533_v27 }
 0x17a   : > { %1954 = vtanh.f32 %v714_v51  ;;  %v705_v58 = vadd.f32 %v695_v53, %v2550_v40  ;;  %v686_v59 = vmul.f32 %v676_v54, %v2557_v48  ;;  %v2569_v60 = vadd.f32 %v640_v57, %v2542_v31 }
 0x17b   : > { %v1787_v1 = vpop.f32.mrf.mxu0  ;;  %v2656_v51 = vadd.s32 72, %v2533_v27  ;;  %v849_v57 = vand.u32 7, %v2641_v39 }
 0x17c   : > { %v715_v3 = vmul.f32 0.7978846, %v705_v58  ;;  %v696_v4 = vmul.f32 %v686_v59, %v2557_v48  ;;  %v677_v5 = vmul.f32 0.044715, %v2569_v60  ;;  %v2666_v58 = vadd.s32 48, %v2533_v27 }
 0x17d   : > { %v643_v10 = vpop.f32.mrf.mxu0  ;;  %v2669_v1 = vrot.slane %v1091_v2, %v2560_v49  ;;  %v856_v2 = vand.u32 7, %v2653_v47  ;;  %vm2810_vm13 = vcmp.eq.s32.totalorder %v849_v57, 0  ;;  %vm2852_vm0 = vcmp.eq.s32.totalorder %v849_v57, 7 }
 0x17e   : > { %1956 = vtanh.f32 %v715_v3  ;;  %v706_v11 = vadd.f32 %v696_v4, %v2557_v48  ;;  %v687_v12 = vmul.f32 %v677_v5, %v2569_v60  ;;  %v2600_v13 = vadd.f32 %v643_v10, %v2542_v31 }
 0x17f   : > { %v1788_v18 = vpop.f32.mrf.mxu0  ;;  %v1235_v3 = vpack.c.bf16 %v2538_v29, %v2538_v29  ;;  %v664_v4 = vmul.f32 0.5, %v2545_v34  ;;  %v2685_v29 = vadd.s32 56, %v2533_v27  ;;  %vm2819_vm14 = vcmp.eq.s32.totalorder %v856_v2, 0 }
 0x180   : > { %v716_v20 = vmul.f32 0.7978846, %v706_v11  ;;  %v697_v21 = vmul.f32 %v687_v12, %v2569_v60  ;;  %v678_v22 = vmul.f32 0.044715, %v2600_v13  ;;  %v3215_v18 = vand.u32 7, %v2656_v51 }
 0x181   : > { %v648_v30 = vpop.f32.mrf.mxu0  ;;  %vm2842_vm15 = vcmp.eq.s32.totalorder %v856_v2, 7 }
 0x182   : > { %1958 = vtanh.f32 %v716_v20  ;;  %v707_v32 = vadd.f32 %v697_v21, %v2569_v60  ;;  %v688_v33 = vmul.f32 %v678_v22, %v2600_v13  ;;  %v2632_v35 = vadd.f32 %v648_v30, %v2542_v31 }
 0x183   : > { %v1791_v41 = vpop.f32.mrf.mxu0  ;;  %vm2716_vm8 = vcmp.eq.s32.totalorder %v3215_v18, 7 }
 0x184   : > { %v717_v43 = vmul.f32 0.7978846, %v707_v32  ;;  %v698_v44 = vmul.f32 %v688_v33, %v2600_v13  ;;  %v679_v45 = vmul.f32 0.044715, %v2632_v35  ;;  %v863_v32 = vand.u32 7, %v2666_v58 }
 0x185   : > { %v651_v50 = vpop.f32.mrf.mxu0  ;;  %v2693_v41 = vadd.s32 64, %v2533_v27 }
 0x186   : > { %1960 = vtanh.f32 %v717_v43  ;;  %v708_v52 = vadd.f32 %v698_v44, %v2600_v13  ;;  %v689_v53 = vmul.f32 %v679_v45, %v2632_v35  ;;  %v2661_v54 = vadd.f32 %v651_v50, %v2542_v31 }
 0x187   : > { %v1955_v55 = vpop.eup %1954  ;;  %v1792_v59 = vpop.f32.mrf.mxu0  ;;  %v1237_v44 = vpack.i.b16 %v1235_v3, %v1235_v3  ;;  %v665_v50 = vmul.f32 0.5, %v2550_v40  ;;  %v2712_v40 = vrot.slane %v2595_v9, %v2560_v49  ;;  %vm2866_vm2 = vcmp.eq.s32.totalorder %v863_v32, 0 }
 0x188   : > { %v734_v5 = vadd.f32 1.0, %v1955_v55  ;;  %v718_v11 = vmul.f32 0.7978846, %v708_v52  ;;  %v699_v12 = vmul.f32 %v689_v53, %v2632_v35  ;;  %v680_v16 = vmul.f32 0.044715, %v2661_v54 }
 0x189   : > { %v656_v34 = vpop.f32.mrf.mxu0 }
 0x18a   : > { %v744_v20 = vmul.f32 %v734_v5, %v664_v4  ;;  %1962 = vtanh.f32 %v718_v11  ;;  %v709_v21 = vadd.f32 %v699_v12, %v2632_v35  ;;  %v657_v22 = vadd.f32 %v656_v34, %v2542_v31 }
 0x18b   : > { %v1957_v30 = vpop.eup %1956  ;;  %v690_v33 = vmul.f32 %v680_v16, %v2661_v54  ;;  %v1795_v43 = vpop.f32.mrf.mxu0 }
 0x18c   : > { %v758_v45 = vmul.f32 %v2573_v61, %v744_v20  ;;  %v735_v52 = vadd.f32 1.0, %v1957_v30  ;;  %v719_v53 = vmul.f32 0.7978846, %v709_v21  ;;  %v681_v3 = vmul.f32 0.044715, %v657_v22 }
 0x18d   : > { %v700_v59 = vmul.f32 %v690_v33, %v2661_v54  ;;  %v659_v4 = vpop.f32.mrf.mxu0  ;;  %v2733_v20 = vrot.slane %v1237_v44, %v2579_v63  ;;  %v2773_v43 = vmul.f32 0.5, %v2661_v54 }
 0x18e   : > { %v2721_v62 = vadd.f32 %v2584_v6, %v758_v45  ;;  %v745_v14 = vmul.f32 %v735_v52, %v665_v50  ;;  %1964 = vtanh.f32 %v719_v53  ;;  %v691_v9 = vmul.f32 %v681_v3, %v657_v22 }
 0x18f   : > { %v1959_v11 = vpop.eup %1958  ;;  %v710_v49 = vadd.f32 %v700_v59, %v2661_v54  ;;  %v1796_v34 = vpop.f32.mrf.mxu0  ;;  %v666_v45 = vmul.f32 0.5, %v2557_v48  ;;  %v667_v59 = vmul.f32 0.5, %v2569_v60  ;;  %v668_v3 = vmul.f32 0.5, %v2600_v13 }
 0x190   : > { %v948_v21 = vrot.slane %v2721_v62, 7  ;;  %v1009_v30 = vrot.slane %v2721_v62, 1  ;;  %v759_v33 = vmul.f32 %v2573_v61, %v745_v14  ;;  %v736_v50 = vadd.f32 1.0, %v1959_v11 }
 0x191   : > { %v720_v63 = vmul.f32 0.7978846, %v710_v49  ;;  %v701_v44 = vmul.f32 %v691_v9, %v657_v22  ;;  %v669_v4 = vmul.f32 0.5, %v2632_v35  ;;  %v1064_v11 = vpack.c.bf16 %v2721_v62, %v3214_v0 }
 0x192   : > { %v966_v53 = vsel %vm957_vm3, %v2593_v8, %v948_v21  ;;  %v2759_v49 = vadd.f32 %v2584_v6, %v759_v33  ;;  %v746_v9 = vmul.f32 %v736_v50, %v666_v45  ;;  %v1027_v34 = vsel %vm1018_vm5, %v2604_v15, %v1009_v30 }
 0x193   : > { %v1961_v48 = vpop.eup %1960  ;;  %v989_v14 = vsel %vm2676_vm4, 0.0, %v966_v53  ;;  %1966 = vtanh.f32 %v720_v63  ;;  %v711_v33 = vadd.f32 %v701_v44, %v657_v22  ;;  %v2775_v0 = vmul.f32 0.5, %v657_v22 }
 0x194   : > { %v1059_v60 = vpack.c.bf16 %v989_v14, %v988_v23  ;;  %v737_v13 = vadd.f32 1.0, %v1961_v48  ;;  %v949_v35 = vrot.slane %v2759_v49, 7  ;;  %v1010_v10 = vrot.slane %v2759_v49, 1 }
 0x195   : > { %v760_v53 = vmul.f32 %v2573_v61, %v746_v9  ;;  %v721_v54 = vmul.f32 0.7978846, %v711_v33  ;;  %v1049_v22 = vsel %vm2699_vm6, 0.0, %v1027_v34  ;;  %v1097_v26 = vmul.bf16 %v2611_v19, %v1064_v11 }
 0x196   : > { %v1082_v45 = vmul.bf16 %v2620_v24, %v1059_v60  ;;  %v747_v50 = vmul.f32 %v737_v13, %v667_v59  ;;  %v965_v63 = vsel %vm957_vm3, %v948_v21, %v949_v35  ;;  %v1026_v44 = vsel %vm1018_vm5, %v1009_v30, %v1010_v10 }
 0x197   : > { %v1963_v23 = vpop.eup %1962  ;;  %v2788_v59 = vadd.f32 %v2584_v6, %v760_v53  ;;  %v1153_v28 = vmul.bf16 %v2624_v25, %v1064_v11  ;;  %v1050_v48 = vsel %vm2705_vm7, 0.0, %v1026_v44  ;;  %v1121_v14 = vmul.bf16 %v2634_v36, %v1059_v60 }
 0x198   : > { %v1086_v30 = vadd.bf16 0, %v1082_v45  ;;  %v990_v17 = vsel %vm2726_vm9, 0.0, %v965_v63  ;;  %v761_v38 = vmul.f32 %v2573_v61, %v747_v50  ;;  %v738_v11 = vadd.f32 1.0, %v1963_v23 }
 0x199   : > { %v950_v9 = vrot.slane %v2788_v59, 7  ;;  %v2806_v31 = vpack.c.bf16 %v2788_v59, %v2759_v49  ;;  %1968 = vtanh.f32 %v721_v54  ;;  %v2823_v13 = vpack.c.bf16 %v1050_v48, %v1049_v22 }
 0x19a   : > { %v1011_v33 = vrot.slane %v2788_v59, 1  ;;  %v2833_v50 = vadd.f32 %v2584_v6, %v761_v38  ;;  %v748_v23 = vmul.f32 %v738_v11, %v668_v3  ;;  %v1101_v44 = vadd.bf16 %v1097_v26, %v1086_v30 }
 0x19b   : > { %v1965_v60 = vpop.eup %1964  ;;  %v964_v53 = vsel %vm957_vm3, %v949_v35, %v950_v9  ;;  %v1154_v12 = vmul.bf16 %v2624_v25, %v2806_v31  ;;  %v1132_v54 = vrot.slane %v1121_v14, 4  ;;  %v1163_v22 = vrot.slane %v1153_v28, 4 }
 0x19c   : > { %v991_v45 = vsel %vm2744_vm10, 0.0, %v964_v53  ;;  %v739_v63 = vadd.f32 1.0, %v1965_v60  ;;  %v951_v35 = vrot.slane %v2833_v50, 7  ;;  %v1012_v18 = vrot.slane %v2833_v50, 1 }
 0x19d   : > { %v2835_v48 = vpack.c.bf16 %v991_v45, %v990_v17  ;;  %v762_v16 = vmul.f32 %v2573_v61, %v748_v23  ;;  %v1109_v3 = vmul.bf16 %v2644_v42, %v2823_v13  ;;  %v2848_v26 = vrot.slane %v1154_v12, 4 }
 0x19e   : > { %v749_v5 = vmul.f32 %v739_v63, %v669_v4  ;;  %v1024_v39 = vsel %vm1018_vm5, %v1011_v33, %v1012_v18  ;;  %v1025_v57 = vsel %vm1018_vm5, %v1010_v10, %v1011_v33  ;;  %v1098_v38 = vmul.bf16 %v2611_v19, %v2806_v31 }
 0x19f   : > { %v1083_v4 = vmul.bf16 %v2620_v24, %v2835_v48  ;;  %v1122_v47 = vmul.bf16 %v2634_v36, %v2835_v48  ;;  %v2861_v2 = vadd.f32 %v2584_v6, %v762_v16  ;;  %v963_v16 = vsel %vm957_vm3, %v950_v9, %v951_v35 }
 0x1a0   : > { %v763_v30 = vmul.f32 %v2573_v61, %v749_v5  ;;  %v1967_v17 = vpop.eup %1966  ;;  %v1052_v5 = vsel %vm2779_vm11, 0.0, %v1024_v39  ;;  %v1051_v9 = vsel %vm2798_vm12, 0.0, %v1025_v57  ;;  %v1113_v23 = vadd.bf16 %v1109_v3, %v1101_v44 }
 0x1a1   : > { %v1133_v11 = vrot.slane %v1122_v47, 4  ;;  %v952_v60 = vrot.slane %v2861_v2, 7  ;;  %v2883_v53 = vpack.c.bf16 %v2861_v2, %v2833_v50  ;;  %v1087_v10 = vadd.bf16 0, %v1083_v4 }
 0x1a2   : > { %v2886_v12 = vadd.f32 %v2584_v6, %v763_v30  ;;  %v1013_v33 = vrot.slane %v2861_v2, 1  ;;  %v740_v45 = vadd.f32 1.0, %v1967_v17  ;;  %v992_v7 = vsel %vm2810_vm13, 0.0, %v963_v16 }
 0x1a3   : > { %v962_v63 = vsel %vm957_vm3, %v951_v35, %v952_v60  ;;  %v2895_v47 = vpack.c.bf16 %v1052_v5, %v1051_v9  ;;  %v1165_v30 = vsel %vm513_vm1, %v1163_v22, %v2848_v26  ;;  %v3271_v44 = vand.u32 7, %v2685_v29 }
 0x1a4   : > { %v993_v4 = vsel %vm2819_vm14, 0.0, %v962_v63  ;;  %v953_v39 = vrot.slane %v2886_v12, 7  ;;  %v1014_v21 = vrot.slane %v2886_v12, 1  ;;  %v1134_v35 = vsel %vm513_vm1, %v1132_v54, %v1133_v11 }
 0x1a5   : > { %vm2905_vm4 = vcmp.eq.s32.totalorder %v3271_v44, 0  ;;  %v2910_v3 = vpack.c.bf16 %v993_v4, %v992_v7  ;;  %v1155_v22 = vmul.bf16 %v2624_v25, %v2883_v53  ;;  %v750_v34 = vmul.f32 %v740_v45, %v2773_v43 }
 0x1a6   : > { %v1102_v57 = vadd.bf16 %v1098_v38, %v1087_v10  ;;  %v1969_v17 = vpop.eup %1968  ;;  %v1023_v16 = vsel %vm1018_vm5, %v1012_v18, %v1013_v33  ;;  %v1099_v5 = vmul.bf16 %v2611_v19, %v2883_v53  ;;  %v961_v9 = vsel %vm957_vm3, %v952_v60, %v953_v39 }
 0x1a7   : > { %v1022_v54 = vsel %vm1018_vm5, %v1013_v33, %v1014_v21  ;;  %v1084_v7 = vmul.bf16 %v2620_v24, %v2910_v3  ;;  %v1123_v43 = vmul.bf16 %v2634_v36, %v2910_v3  ;;  %v1145_v38 = vadd.bf16 %v1134_v35, %v1113_v23 }
 0x1a8   : > { %v1184_v10 = vmul.bf16 %v2637_v37, %v2823_v13  ;;  %v1054_v18 = vsel %vm2842_vm15, 0.0, %v1022_v54  ;;  %v764_v45 = vmul.f32 %v2573_v61, %v750_v34  ;;  %v741_v63 = vadd.f32 1.0, %v1969_v17 }
 0x1a9   : > { %v1110_v60 = vmul.bf16 %v2644_v42, %v2895_v47  ;;  %v1053_v33 = vsel %vm2852_vm0, 0.0, %v1023_v16  ;;  %v2936_v4 = vrot.slane %v1123_v43, 4  ;;  %v2938_v44 = vrot.slane %v1155_v22, 4 }
 0x1aa   : > { %v3274_v23 = vand.u32 7, %v2693_v41  ;;  %v3277_v52 = vand.u32 7, %v2656_v51  ;;  %v1185_v28 = vmul.bf16 %v2637_v37, %v2895_v47  ;;  %v1088_v34 = vadd.bf16 0, %v1084_v7 }
 0x1ab   : > { %v994_v22 = vsel %vm2866_vm2, 0.0, %v961_v9  ;;  %v2957_v17 = vadd.f32 %v2584_v6, %v764_v45  ;;  %v751_v16 = vmul.f32 %v741_v63, %v2775_v0  ;;  %v3280_v54 = vand.u32 7, %v2685_v29 }
 0x1ac   : > { %vm2942_vm6 = vcmp.eq.s32.totalorder %v3274_v23, 0  ;;  %vm2948_vm7 = vcmp.eq.s32.totalorder %v3277_v52, 0  ;;  %vm2968_vm10 = vcmp.eq.s32.totalorder %v863_v32, 7  ;;  %v1176_v7 = vadd.bf16 %v1165_v30, %v1145_v38 }
 0x1ad   : > { %vm2962_vm9 = vcmp.eq.s32.totalorder %v3280_v54, 7  ;;  %v1194_v14 = vrot.slane %v1184_v10, 4  ;;  %v1195_v9 = vrot.slane %v1185_v28, 4  ;;  %v2972_v23 = vpack.c.bf16 %v1054_v18, %v1053_v33 }
 0x1ae   : > { %v954_v45 = vrot.slane %v2957_v17, 7  ;;  %v765_v0 = vmul.f32 %v2573_v61, %v751_v16  ;;  %v1114_v29 = vadd.bf16 %v1110_v60, %v1102_v57  ;;  %v1215_v63 = vmul.bf16 %v2712_v40, %v2835_v48 }
 0x1af   : > { %v1015_v52 = vrot.slane %v2957_v17, 1  ;;  %v2981_v58 = vpack.c.bf16 %v2957_v17, %v2886_v12  ;;  %v1196_v32 = vsel %vm513_vm1, %v1194_v14, %v1195_v9  ;;  %v1136_v30 = vsel %vm513_vm1, %v1133_v11, %v2936_v4 }
 0x1b0   : > { %v1103_v38 = vadd.bf16 %v1099_v5, %v1088_v34  ;;  %v960_v10 = vsel %vm957_vm3, %v953_v39, %v954_v45  ;;  %v1227_v61 = vmul.bf16 %v2669_v1, %v2806_v31  ;;  %v1243_v48 = vmul.bf16 %v2733_v20, %v2895_v47 }
 0x1b1   : > { %v995_v57 = vsel %vm2905_vm4, 0.0, %v960_v10  ;;  %v2995_v18 = vadd.f32 %v2584_v6, %v765_v0  ;;  %v1207_v60 = vadd.bf16 %v1196_v32, %v1176_v7  ;;  %v1111_v11 = vmul.bf16 %v2644_v42, %v2972_v23 }
 0x1b2   : > { %v2999_v5 = vpack.c.bf16 %v995_v57, %v994_v22  ;;  %v1146_v33 = vadd.bf16 %v1136_v30, %v1114_v29  ;;  %v1167_v31 = vsel %vm513_vm1, %v2848_v26, %v2938_v44  ;;  %v1186_v47 = vmul.bf16 %v2637_v37, %v2972_v23 }
 0x1b3   : > { %v1021_v39 = vsel %vm1018_vm5, %v1014_v21, %v1015_v52  ;;  %v1156_v6 = vmul.bf16 %v2624_v25, %v2981_v58  ;;  %v955_v55 = vrot.slane %v2995_v18, 7  ;;  %v1016_v28 = vrot.slane %v2995_v18, 1 }
 0x1b4   : > { %v1085_v34 = vmul.bf16 %v2620_v24, %v2999_v5  ;;  %v1124_v22 = vmul.bf16 %v2634_v36, %v2999_v5  ;;  %v1219_v26 = vadd.bf16 %v1215_v63, %v1207_v60  ;;  %v1197_v16 = vrot.slane %v1186_v47, 4 }
 0x1b5   : > { %v3285_v54 = vand.u32 7, %v2693_v41  ;;  %v958_v21 = vsel %vm957_vm3, %v955_v55, %v2593_v8  ;;  %v959_v14 = vsel %vm957_vm3, %v954_v45, %v955_v55  ;;  %v1020_v24 = vsel %vm1018_vm5, %v1015_v52, %v1016_v28 }
 0x1b6   : > { %v1177_v0 = vadd.bf16 %v1167_v31, %v1146_v33  ;;  %v1100_v29 = vmul.bf16 %v2611_v19, %v2981_v58  ;;  %v996_v41 = vsel %vm2942_vm6, 0.0, %v959_v14  ;;  %v997_v63 = vsel %vm2948_vm7, 0.0, %v958_v21 }
 0x1b7   : > { %vm3018_vm11 = vcmp.eq.s32.totalorder %v3285_v54, 7  ;;  %v3288_v32 = vmov 0.0   ;;  %v1089_v8 = vadd.bf16 0, %v1085_v34  ;;  %v1137_v10 = vrot.slane %v1124_v22, 4 }
 0x1b8   : > { %v3037_v30 = vpack.c.bf16 %v3288_v32, %v2995_v18  ;;  %v1056_v45 = vsel %vm2962_vm9, 0.0, %v1020_v24  ;;  %v3041_v52 = vpack.c.bf16 %v997_v63, %v996_v41  ;;  %v1055_v19 = vsel %vm2968_vm10, 0.0, %v1021_v39 }
 0x1b9   : > { %v1168_v57 = vrot.slane %v1156_v6, 4  ;;  %v1231_v13 = vadd.bf16 %v1227_v61, %v1219_v26  ;;  %v1198_v60 = vsel %vm513_vm1, %v1195_v9, %v1197_v16  ;;  %v1019_v35 = vsel %vm1018_vm5, %v1016_v28, %v2604_v15 }
 0x1ba   : > { %v1125_v33 = vmul.bf16 %v2634_v36, %v3041_v52  ;;  %v1208_v31 = vadd.bf16 %v1198_v60, %v1177_v0  ;;  %v1216_v51 = vmul.bf16 %v2712_v40, %v2910_v3  ;;  %v1157_v47 = vmul.bf16 %v2624_v25, %v3037_v30 }
 0x1bb   : > { %v1247_v43 = vadd.bf16 %v1243_v48, %v1231_v13  ;;  %v3055_v39 = vpack.c.bf16 %v1056_v45, %v1055_v19  ;;  %v1115_v61 = vadd.bf16 %v1111_v11, %v1103_v38  ;;  %v1104_v6 = vadd.bf16 %v1100_v29, %v1089_v8 }
 0x1bc   : > { %v1220_v9 = vadd.bf16 %v1216_v51, %v1208_v31  ;;  %v1228_v27 = vmul.bf16 %v2669_v1, %v2883_v53  ;;  %v1138_v55 = vsel %vm513_vm1, %v2936_v4, %v1137_v10  ;;  %v1139_v22 = vrot.slane %v1125_v33, 4 }
 0x1bd   : > { %v1251_v36 = vunpack.c.l.bf16 %v1247_v43  ;;  %v1252_v28 = vunpack.c.h.bf16 %v1247_v43  ;;  %v1112_v3 = vmul.bf16 %v2644_v42, %v3055_v39  ;;  %v1147_v34 = vadd.bf16 %v1138_v55, %v1115_v61 }
 0x1be   : > { %v1232_v25 = vadd.bf16 %v1228_v27, %v1220_v9  ;;  %v1244_v48 = vmul.bf16 %v2733_v20, %v2972_v23  ;;  %v1187_v38 = vmul.bf16 %v2637_v37, %v3055_v39  ;;  %v1170_v11 = vrot.slane %v1157_v47, 4 }
 0x1bf   : > { %v1263_v53 = vadd.f32 %v2649_v46, %v1251_v36  ;;  %v1264_v26 = vadd.f32 %v2649_v46, %v1252_v28  ;;  %v1169_v4 = vsel %vm513_vm1, %v2938_v44, %v1168_v57  ;;  %v1057_v14 = vsel %vm3018_vm11, 0.0, %v1019_v35 }
 0x1c0   : > { %v1248_v54 = vadd.bf16 %v1244_v48, %v1232_v25  ;;  %v1178_v21 = vadd.bf16 %v1169_v4, %v1147_v34  ;;  %v1199_v42 = vrot.slane %v1187_v38, 4  ;;  %v3289_v0 = vsel %vm2716_vm8, 0.0, %v2604_v15 }
 0x1c1   : > { %v3074_v24 = vadd.f32 %v1263_v53, %v2721_v62  ;;  %v3077_v23 = vadd.f32 %v1264_v26, %v2759_v49  ;;  %v1073_v29 = vpack.c.bf16 %v3289_v0, %v1057_v14  ;;  %v1116_v41 = vadd.bf16 %v1112_v3, %v1104_v6 }
 0x1c2   : > { %v1253_v63 = vunpack.c.l.bf16 %v1248_v54  ;;  %v1254_v44 = vunpack.c.h.bf16 %v1248_v54  ;;  %v1200_v32 = vsel %vm513_vm1, %v1197_v16, %v1199_v42  ;;  %v1140_v8 = vsel %vm513_vm1, %v1137_v10, %v1139_v22 }
 0x1c3   : > { %v1287_v7 = vmul.f32 0.044715, %v3074_v24  ;;  %v1288_v62 = vmul.f32 0.044715, %v3077_v23  ;;  %v1217_v49 = vmul.bf16 %v2712_v40, %v2999_v5  ;;  %v1209_v15 = vadd.bf16 %v1200_v32, %v1178_v21 }
 0x1c4   : > { %v1265_v45 = vadd.f32 %v2649_v46, %v1253_v63  ;;  %v1266_v56 = vadd.f32 %v2649_v46, %v1254_v44  ;;  %v1148_v19 = vadd.bf16 %v1140_v8, %v1116_v41  ;;  %v1171_v13 = vsel %vm513_vm1, %v1168_v57, %v1170_v11 }
 0x1c5   : > { %v1295_v60 = vmul.f32 %v1287_v7, %v3074_v24  ;;  %v1296_v16 = vmul.f32 %v1288_v62, %v3077_v23  ;;  %v1188_v10 = vmul.bf16 %v2637_v37, %v1073_v29  ;;  %v1221_v5 = vadd.bf16 %v1217_v49, %v1209_v15 }
 0x1c6   : > { %v3096_v35 = vadd.f32 %v1265_v45, %v2788_v59  ;;  %v3099_v33 = vadd.f32 %v1266_v56, %v2833_v50  ;;  %v1179_v31 = vadd.bf16 %v1171_v13, %v1148_v19  ;;  %v1229_v57 = vmul.bf16 %v2669_v1, %v2981_v58 }
 0x1c7   : > { %v1303_v51 = vmul.f32 %v1295_v60, %v3074_v24  ;;  %v1304_v47 = vmul.f32 %v1296_v16, %v3077_v23  ;;  %v1201_v43 = vrot.slane %v1188_v10, 4  ;;  %v1245_v59 = vmul.bf16 %v2733_v20, %v3055_v39 }
 0x1c8   : > { %v1289_v61 = vmul.f32 0.044715, %v3096_v35  ;;  %v1290_v37 = vmul.f32 0.044715, %v3099_v33  ;;  %v1233_v9 = vadd.bf16 %v1229_v57, %v1221_v5  ;;  %v1218_v28 = vmul.bf16 %v2712_v40, %v3041_v52 }
 0x1c9   : > { %v1311_v50 = vadd.f32 %v1303_v51, %v3074_v24  ;;  %v1312_v6 = vadd.f32 %v1304_v47, %v3077_v23  ;;  %v1202_v27 = vsel %vm513_vm1, %v1199_v42, %v1201_v43  ;;  %v1230_v39 = vmul.bf16 %v2669_v1, %v3037_v30 }
 0x1ca   : > { %v1297_v55 = vmul.f32 %v1289_v61, %v3096_v35  ;;  %v1298_v36 = vmul.f32 %v1290_v37, %v3099_v33  ;;  %v1210_v58 = vadd.bf16 %v1202_v27, %v1179_v31  ;;  %v1249_v22 = vadd.bf16 %v1245_v59, %v1233_v9 }
 0x1cb   : > { %v1319_v3 = vmul.f32 0.7978846, %v1311_v50  ;;  %v1320_v34 = vmul.f32 0.7978846, %v1312_v6  ;;  %v1246_v26 = vmul.bf16 %v2733_v20, %v1073_v29  ;;  %v1279_v10 = vmul.f32 0.5, %v3074_v24 }
 0x1cc   : > { %v1305_v25 = vmul.f32 %v1297_v55, %v3096_v35  ;;  %v1306_v48 = vmul.f32 %v1298_v36, %v3099_v33  ;;  %v1222_v38 = vadd.bf16 %v1218_v28, %v1210_v58  ;;  %v1255_v11 = vunpack.c.l.bf16 %v1249_v22 }
 0x1cd   : > { %1970 = vtanh.f32 %v1319_v3  ;;  %v1256_v53 = vunpack.c.h.bf16 %v1249_v22  ;;  %v1280_v51 = vmul.f32 0.5, %v3077_v23  ;;  %v1281_v24 = vmul.f32 0.5, %v3096_v35 }
 0x1ce   : > { %1972 = vtanh.f32 %v1320_v34  ;;  %v1313_v4 = vadd.f32 %v1305_v25, %v3096_v35  ;;  %v1314_v40 = vadd.f32 %v1306_v48, %v3099_v33  ;;  %v1234_v52 = vadd.bf16 %v1230_v39, %v1222_v38 }
 0x1cf   : > { %v1267_v54 = vadd.f32 %v2649_v46, %v1255_v11  ;;  %v1268_v1 = vadd.f32 %v2649_v46, %v1256_v53  ;;  %v1282_v36 = vmul.f32 0.5, %v3099_v33 }
 0x1d0   : > { %v1321_v30 = vmul.f32 0.7978846, %v1313_v4  ;;  %v1322_v21 = vmul.f32 0.7978846, %v1314_v40  ;;  %v1250_v42 = vadd.bf16 %v1246_v26, %v1234_v52 }
 0x1d1   : > { %v1275_v14 = vadd.f32 %v1267_v54, %v2861_v2  ;;  %v1276_v0 = vadd.f32 %v1268_v1, %v2886_v12 }
 0x1d2   : > { %1974 = vtanh.f32 %v1321_v30  ;;  %v1257_v41 = vunpack.c.l.bf16 %v1250_v42  ;;  %v1258_v20 = vunpack.c.h.bf16 %v1250_v42 }
 0x1d3   : > { %1976 = vtanh.f32 %v1322_v21  ;;  %v1291_v29 = vmul.f32 0.044715, %v1275_v14  ;;  %v1292_v63 = vmul.f32 0.044715, %v1276_v0  ;;  %v1283_v25 = vmul.f32 0.5, %v1275_v14 }
 0x1d4   : > { %v1269_v44 = vadd.f32 %v2649_v46, %v1257_v41  ;;  %v1270_v32 = vadd.f32 %v2649_v46, %v1258_v20  ;;  %v1284_v38 = vmul.f32 0.5, %v1276_v0 }
 0x1d5   : > { %v1299_v8 = vmul.f32 %v1291_v29, %v1275_v14  ;;  %v1300_v7 = vmul.f32 %v1292_v63, %v1276_v0 }
 0x1d6   : > { %v1277_v62 = vadd.f32 %v1269_v44, %v2957_v17  ;;  %v1278_v49 = vadd.f32 %v1270_v32, %v2995_v18 }
 0x1d7   : > { %v1307_v45 = vmul.f32 %v1299_v8, %v1275_v14  ;;  %v1308_v2 = vmul.f32 %v1300_v7, %v1276_v0 }
 0x1d8   : > { %v1293_v56 = vmul.f32 0.044715, %v1277_v62  ;;  %v1294_v15 = vmul.f32 0.044715, %v1278_v49  ;;  %v1285_v40 = vmul.f32 0.5, %v1277_v62  ;;  %v1286_v54 = vmul.f32 0.5, %v1278_v49 }
 0x1d9   : > { %v1315_v12 = vadd.f32 %v1307_v45, %v1275_v14  ;;  %v1316_v13 = vadd.f32 %v1308_v2, %v1276_v0  ;;  %v1716_v14 = vld [vmem:[%s3199_s6] ss:$0 sm:$0xff] }
 0x1da   : > { %v1971_v19 = vpop.eup %1970  ;;  %v1301_v60 = vmul.f32 %v1293_v56, %v1277_v62  ;;  %v1302_v46 = vmul.f32 %v1294_v15, %v1278_v49 }
 0x1db   : > { %v1973_v16 = vpop.eup %1972  ;;  %v1335_v5 = vadd.f32 1.0, %v1971_v19  ;;  %v1323_v31 = vmul.f32 0.7978846, %v1315_v12  ;;  %v1324_v17 = vmul.f32 0.7978846, %v1316_v13 }
 0x1dc   : > { %v1336_v47 = vadd.f32 1.0, %v1973_v16  ;;  %v1309_v57 = vmul.f32 %v1301_v60, %v1277_v62  ;;  %v1310_v43 = vmul.f32 %v1302_v46, %v1278_v49 }
 0x1dd   : > { %v1343_v18 = vmul.f32 %v1335_v5, %v1279_v10  ;;  %1978 = vtanh.f32 %v1323_v31 }
 0x1de   : > { %v1344_v61 = vmul.f32 %v1336_v47, %v1280_v51  ;;  %1980 = vtanh.f32 %v1324_v17  ;;  %v1317_v37 = vadd.f32 %v1309_v57, %v1277_v62  ;;  %v1318_v50 = vadd.f32 %v1310_v43, %v1278_v49 }
 0x1df   : > { %v1975_v59 = vpop.eup %1974 }
 0x1e0   : > { %v1977_v6 = vpop.eup %1976  ;;  %v1351_v9 = vpack.c.bf16 %v1344_v61, %v1343_v18  ;;  %v1337_v27 = vadd.f32 1.0, %v1975_v59  ;;  %v1325_v55 = vmul.f32 0.7978846, %v1317_v37  ;;  %v1326_v58 = vmul.f32 0.7978846, %v1318_v50 }
 0x1e1   : > { %v1338_v23 = vadd.f32 1.0, %v1977_v6 }
 0x1e2   : > { %1813 = vmatprep.mubr.bf16.mxu1 %v1351_v9  ;;  %v1345_v28 = vmul.f32 %v1337_v27, %v1281_v24  ;;  %1982 = vtanh.f32 %v1325_v55 }
 0x1e3   : > { %v1346_v3 = vmul.f32 %v1338_v23, %v1282_v36  ;;  %1984 = vtanh.f32 %v1326_v58 }
 0x1e5   : > { %v1352_v34 = vpack.c.bf16 %v1346_v3, %v1345_v28 }
 0x1e7   : > { %1814 = vmatmul.mubr.bf16.vlgmr.msra.gmra.mxu1 %v1352_v34 }
 0x1ea   : > { %v1979_v22 = vpop.eup %1978 }
 0x1eb   : > { %v1981_v39 = vpop.eup %1980  ;;  %v1339_v48 = vadd.f32 1.0, %v1979_v22 }
 0x1ec   : > { %v1340_v35 = vadd.f32 1.0, %v1981_v39 }
 0x1ed   : > { %v1347_v11 = vmul.f32 %v1339_v48, %v1283_v25 }
 0x1ee   : > { %v1348_v53 = vmul.f32 %v1340_v35, %v1284_v38 }
 0x1ef   : > { %v1983_v26 = vpop.eup %1982 }
 0x1f0   : > { %v1985_v33 = vpop.eup %1984  ;;  %v1353_v4 = vpack.c.bf16 %v1348_v53, %v1347_v11  ;;  %v1341_v52 = vadd.f32 1.0, %v1983_v26 }
 0x1f1   : > { %v1342_v1 = vadd.f32 1.0, %v1985_v33 }
 0x1f2   : > { %1817 = vmatprep.mubr.bf16.mxu1 %v1353_v4  ;;  %v1349_v30 = vmul.f32 %v1341_v52, %v1285_v40 }
 0x1f3   : > { %v1350_v21 = vmul.f32 %v1342_v1, %v1286_v54 }
 0x1f5   : > { %v1354_v42 = vpack.c.bf16 %v1350_v21, %v1349_v30 }
 0x1f7   : > { %1818 = vmatmul.mubr.bf16.gmra.mxu1 %v1354_v42 }
 0x2a7   : > { %v1815_v0 = vpop.f32.mrf.mxu1 }
 0x2a8   : > { %v1469_v41 = vadd.f32 %v1815_v0, %v1716_v14 }
 0x2a9   : > { %v1460_v20 = vpop.f32.mrf.mxu1 }
 0x2aa   : > { %1493 = vst [vmem:[%s461_s12 + $0x10] sm:$0xff] %v1469_v41  ;;  %v1461_v29 = vadd.f32 %v1716_v14, %v1460_v20 }
 0x2ab   : > { %v1816_v63 = vpop.f32.mrf.mxu1 }
 0x2ac   : > { %1491 = vst [vmem:[%s461_s12] sm:$0xff] %v1461_v29  ;;  %v1472_v44 = vadd.f32 %v1816_v63, %v1716_v14 }
 0x2ad   : > { %v1463_v32 = vpop.f32.mrf.mxu1 }
 0x2ae   : > { %1494 = vst [vmem:[%s461_s12 + $0x18] sm:$0xff] %v1472_v44  ;;  %v1464_v8 = vadd.f32 %v1716_v14, %v1463_v32 }
 0x2b0   : > { %1492 = vst [vmem:[%s461_s12 + $0x8] sm:$0xff] %v1464_v8 }
 0x2b7   : > { %v1819_v7 = vpop.f32.mrf.mxu1 }
 0x2b8   : > { %v1485_v62 = vadd.f32 %v1819_v7, %v1716_v14 }
 0x2b9   : > { %v1476_v49 = vpop.f32.mrf.mxu1 }
 0x2ba   : > { %1497 = vst [vmem:[%s461_s12 + $0x30] sm:$0xff] %v1485_v62  ;;  %v1477_v45 = vadd.f32 %v1716_v14, %v1476_v49 }
 0x2bb   : > { %v1820_v2 = vpop.f32.mrf.mxu1 }
 0x2bc   : > { %1495 = vst [vmem:[%s461_s12 + $0x20] sm:$0xff] %v1477_v45  ;;  %v1488_v56 = vadd.f32 %v1820_v2, %v1716_v14 }
 0x2bd   : > { %v1479_v12 = vpop.f32.mrf.mxu1 }
 0x2be   : > { %1498 = vst [vmem:[%s461_s12 + $0x38] sm:$0xff] %v1488_v56  ;;  %v1480_v15 = vadd.f32 %v1716_v14, %v1479_v12 }
 0x2c0   : > { %1496 = vst [vmem:[%s461_s12 + $0x28] sm:$0xff] %v1480_v15 }
 0x2c1   : > { %2161 = shalt.err (!%p2158_p11)
}
 0x2c2   : > { %s2162_s22 = scalar_lea.hbm %s3145_s1, 1024  ;;  %s2166_s9 = scalar_lea.hbm %s3290_s17, 2048 }
 0x2c3   : > { %p2163_p9 = scmp.ne.s32.totalorder %s3145_s1, %s2162_s22  ;;  %p2167_p0 = scmp.lt.s32.totalorder %s3145_s1, %s3290_s17 }
 0x2c4   : > { %p2168_p13 = scmp.lt.s32.totalorder %s2166_s9, %s2162_s22 }
 0x2c5   : > { %p2164_p1 = pnand %p2163_p9, %p3291_p4 }
 0x2c6   : > { %p2169_p6 = por %p2168_p13, %p2167_p0 }
 0x2c7   : > { %p2165_p12 = pneg %p2164_p1 }
 0x2c9   : > { %p2170_p8 = pnand %p2169_p6, %p2165_p12 }
 0x2cb   : > { %2173 = shalt.err (!%p2170_p8)
}
 0x2cc   : > { %s2255_s30 = smov 128   ;;  %s2256_s10 = smov 8  }
 0x2cd   : > { %1839 = dma.vmem_to_hbm [thread:$0]  (%p3291_p4), %s3140_s28, 1024, %s3145_s1, %s1500_s20, %s2255_s30, %s2255_s30, %s2256_s10  }
 0x2ce PF: > { %s3292_s3 = sld [smem:[#allocation20_spill]]  ;;  %p3295_p10 = scmp.ge.s32.totalorder %s2240_s29, 2 }
 0x2cf   : > { %s3293_s12 = sld [smem:[#allocation22_spill]] }
 0x2d4   : > { %s1530_s8 = sand.u32 1, %s3292_s3  }
 0x2d5   : > { %p3294_p3 = scmp.ne.s32.totalorder %s3293_s12, 0  ;;  %s1531_s7 = scalar_lea.sflag [#allocation5], %s1530_s8 }
 0x2d7   : > { %p1862_p2 = pnand %p3295_p10, %p3294_p3 }
 0x2d9   : > { %p1863_p5 = pneg %p1862_p2 }
 0x2db   : > { %2215 = dma.done.wait (%p1863_p5), %s1531_s7, 1024  }
 0x2dc   : > { %2217 = vsyncadd (%p1863_p5), %s1531_s7, 4294966272  ;;  %s28_s29 = sadd.s32 1, %s2240_s29   ;;  %s3296_s11 = sld [smem:[#allocation24_spill]] }
 0x2dd   : > { %p25_p7 = scmp.ge.s32.totalorder %s28_s29, 4   ;;  %s3297_s27 = sld [smem:[#allocation21_spill]] }
 0x2de   : > { %s3298_s28 = sld [smem:[#allocation23_spill]]  ;;  %s3299_s24 = smov %s2224_s25 }
 0x2df   : > { %s3300_s25 = smov %s2228_s26  ;;  %27 = sbr.rel (!%p25_p7) target bundleno = 14 (0xe), region = 133 }
 0x2e2   : > { %s3301_s26 = smov %s3296_s11 }
 0x2e4   :  { %1536 = vsyncpa [#allocation4], 1 }
 0x2e5   :  { %1538 = vsyncpa [#allocation4 + $0x1], 1 }
 0x2e6   :  { %1539 = vsyncpa [#allocation7], 1 }
 0x2e7   :  { %1541 = vsyncpa [#allocation7 + $0x1], 1 }
 0x2e8   :  { %1542 = vsyncpa [#allocation10], 1 }
 0x2e9   :  { %1543 = vsyncpa [#allocation13], 1 }
 0x2ea   :  { %1544 = vsyncpa [#allocation5], 1 }
 0x2eb   :  { %1546 = vsyncpa [#allocation5 + $0x1], 1 }

</bundles_post_ra>
